<compile_context>
chip_gen: v7x
topology: tpu7x:2x2x1
jax: 0.10.0
libtpu: 0.0.40
codegen_flags: <defaults>
</compile_context>

<pallas_src>
import functools

import jax
import jax.numpy as jnp
import numpy as np
from jax.experimental import pallas as pl
from jax.experimental.pallas import tpu as pltpu


def _round_up(v, m):
    return -(-v // m) * m


def _fused_upsample_conv_kernel(x_ref, w_ref, b_ref, o_ref, *, th, W, C):
    """Sub-pixel nearest-2x upsample + 3x3 conv on one padded row tile.

    x_ref: (1, th+2, Wp, C)    zero-padded, original-resolution NHWC row tile
                               (Wp = W+2 rounded up to a sublane multiple),
                               already in the compute dtype (bf16 by default)
    w_ref: (16, C, C)          per-(phase, tap) folded weights; index
                               ((pi*2+pj)*2+dr)*2+dc, each (Cin, Cout)
    b_ref: (1, C)              f32 bias
    o_ref: (1, th, 2*W, 2*C)   output tile: row axis is pi-major (pi*W + w),
                               channel axis is pj-major (pj*C + c)
    """
    x = x_ref[0]                                     # (th+2, Wp, C)
    bias = b_ref[0].astype(jnp.float32)              # (C,)

    # The 9 distinct shifted taps of the 3x3 stencil, each flattened into a
    # lane-dense (th*W, C) matmul operand.  No lane-axis concatenation / 9C
    # im2col temp; each tap is materialized once and reused by the phases.
    taps = [[x[r:r + th, c:c + W, :].reshape(th * W, C) for c in range(3)]
            for r in range(3)]

    for pi in range(2):
        for pj in range(2):
            acc = jnp.zeros((th * W, C), jnp.float32)
            for dr in range(2):
                for dc in range(2):
                    widx = ((pi * 2 + pj) * 2 + dr) * 2 + dc
                    acc = acc + jnp.dot(taps[pi + dr][pj + dc], w_ref[widx],
                                        preferred_element_type=jnp.float32)
            y = (acc + bias).reshape(th, W, C).astype(o_ref.dtype)
            # pi-major rows / pj-major channels -> wrapper depth-to-space is a
            # free reshape (no extra HBM pass over the 4x-sized output).
            o_ref[0, :, pi * W:(pi + 1) * W, pj * C:(pj + 1) * C] = y


def _fold_weights_per_phase(weight_oihw):
    """Fold the OIHW 3x3 kernel into per-(phase, tap) (Cin, Cout) matrices.

    For nearest-2x upsampling followed by a same-padded 3x3 conv, output phase
    pi (rows) only reads padded-original rows {r+pi, r+pi+1}; the 3 kernel
    rows collapse onto those two taps as:
        pi=0: tap0 <- {ky=0},   tap1 <- {ky=1, ky=2}
        pi=1: tap0 <- {ky=0,1}, tap1 <- {ky=2}
    (same mapping for columns / pj).  Result shape: (16, Cin, Cout), ordered
    ((pi*2+pj)*2+dr)*2+dc.
    """
    w_hwio = jnp.transpose(weight_oihw, (2, 3, 1, 0))   # (3, 3, Cin, Cout)
    groups = (((0,), (1, 2)), ((0, 1), (2,)))           # [phase][tap] -> kernel taps
    blocks = []
    for pi in range(2):
        for pj in range(2):
            for dr in range(2):
                for dc in range(2):
                    w = sum(w_hwio[ky, kx]
                            for ky in groups[pi][dr]
                            for kx in groups[pj][dc])
                    blocks.append(w)                     # (Cin, Cout)
    return jnp.stack(blocks, axis=0)                     # (16, Cin, Cout)


def _pick_tile_h(H, W, Wp, C, in_isz, out_isz, weight_bytes,
                 budget_bytes=24 * 1024 * 1024):
    """Largest row tile whose FULL per-step working set fits the budget."""
    def working_set(th):
        in_blk = (th + 2) * Wp * C * in_isz
        out_blk = th * (2 * W) * (2 * C) * out_isz
        tap_copies = 9 * th * W * C * in_isz             # shifted tap operands
        acc = th * W * C * 4                             # live f32 accumulator
        # x2: double-buffered input/output blocks and (default) weight buffers.
        return 2 * (in_blk + out_blk) + tap_copies + acc + 2 * weight_bytes

    divisors = [d for d in range(1, H + 1) if H % d == 0]
    fit = [d for d in divisors if working_set(d) <= budget_bytes]
    if not fit:
        # Guard (review): even a single row blows the budget; fall back to 1
        # and rely on the explicit vmem limit.
        return 1
    # Prefer >= 2 grid steps so a tiny batch still exposes parallel work for
    # v7x's two TensorCores.
    pref = [d for d in fit if H // d >= 2] or fit
    return max(pref)


def upsample_forward(x_nchw, weight_oihw, bias, *, tile_h=None,
                     compute_dtype=jnp.bfloat16, nchw_out=True):
    """Nearest 2x upsample followed by 3x3 conv (padding=1). NCHW in/out.

    compute_dtype: dtype for the MXU operands (bf16 default, f32 accumulation).
                   None => exact f32 path.
    nchw_out:      False returns NHWC with zero post-kernel data movement.
    """
    N, C, H, W = x_nchw.shape
    out_dtype = x_nchw.dtype
    cdt = out_dtype if compute_dtype is None else compute_dtype
    in_isz = jnp.dtype(cdt).itemsize
    out_isz = jnp.dtype(out_dtype).itemsize
    Wp = _round_up(W + 2, 8)                 # sublane-aligned padded width
    weight_bytes = 16 * C * C * in_isz

    if tile_h is None:
        tile_h = _pick_tile_h(H, W, Wp, C, in_isz, out_isz, weight_bytes)
    assert H % tile_h == 0, (H, tile_h)
    nt = H // tile_h

    # One fused XLA pass over the small original-resolution input:
    # NCHW->NHWC, cast to compute dtype, zero pad, halo row tiles.
    # TODO(synk): express the 2-row halo via pl.Element / manual DMA windows so
    # the overlap rows are never duplicated in HBM.
    x = jnp.transpose(x_nchw, (0, 2, 3, 1)).astype(cdt)          # (N, H, W, C)
    x = jnp.pad(x, ((0, 0), (1, 1), (1, Wp - W - 1), (0, 0)))    # (N, H+2, Wp, C)
    x_tiles = jnp.stack(
        [x[:, t * tile_h: t * tile_h + tile_h + 2] for t in range(nt)],
        axis=1)                                                  # (N, nt, th+2, Wp, C)
    x_tiles = x_tiles.reshape(N * nt, tile_h + 2, Wp, C)

    w_fold = _fold_weights_per_phase(weight_oihw).astype(cdt)    # (16, C, C)
    b_row = bias.reshape(1, C).astype(jnp.float32)

    kernel = functools.partial(_fused_upsample_conv_kernel,
                               th=tile_h, W=W, C=C)

    out_k = pl.pallas_call(
        kernel,
        out_shape=jax.ShapeDtypeStruct((N * nt, tile_h, 2 * W, 2 * C), out_dtype),
        grid_spec=pltpu.PrefetchScalarGridSpec(
            num_scalar_prefetch=0,
            grid=(N * nt,),
            in_specs=[
                pl.BlockSpec((1, tile_h + 2, Wp, C), lambda i: (i, 0, 0, 0)),
                # Grid-invariant weights/bias (fetched once, index map constant).
                # TODO(synk): single-buffer them (pipeline_mode=pl.Buffered(1))
                # and/or add an output-channel grid axis for very large C.
                pl.BlockSpec((16, C, C), lambda i: (0, 0, 0)),
                pl.BlockSpec((1, C), lambda i: (0, 0)),
            ],
            out_specs=pl.BlockSpec((1, tile_h, 2 * W, 2 * C),
                                   lambda i: (i, 0, 0, 0)),
        ),
        compiler_params=pltpu.CompilerParams(
            dimension_semantics=("parallel",),
            vmem_limit_bytes=48 * 1024 * 1024),
    )(x_tiles, w_fold, b_row)

    # Depth-to-space + NHWC assembly: pure row-major reshapes, zero data movement.
    out_nhwc = (out_k.reshape(N, nt, tile_h, 2, W, 2, C)
                     .reshape(N, 2 * H, 2 * W, C))
    if not nchw_out:
        return out_nhwc
    # Only remaining pass over the output: NHWC -> NCHW for PyTorch parity.
    return jnp.transpose(out_nhwc, (0, 3, 1, 2))


if __name__ == "__main__":
    key = jax.random.PRNGKey(0)
    N, C, H, W = 2, 4, 16, 16

    kx, kw, kb = jax.random.split(key, 3)
    x = jax.random.normal(kx, (N, C, H, W), dtype=jnp.float32)

    # Deterministic parameter init (uniform, same bound PyTorch Conv2d uses).
    fan_in = C * 3 * 3
    bound = 1.0 / np.sqrt(fan_in)
    weight = jax.random.uniform(kw, (C, C, 3, 3), jnp.float32, -bound, bound)  # OIHW
    bias = jax.random.uniform(kb, (C,), jnp.float32, -bound, bound)

    # Reference: XLA conv on the nearest-upsampled input (f32).
    x_up = jnp.repeat(jnp.repeat(x, 2, axis=2), 2, axis=3)
    ref = jax.lax.conv_general_dilated(
        x_up, weight, window_strides=(1, 1), padding=((1, 1), (1, 1)),
        dimension_numbers=("NCHW", "OIHW", "NCHW"),
    ) + bias.reshape(1, C, 1, 1)
    ref = np.asarray(jax.block_until_ready(ref))

    # Exact f32 path (strict check).
    out_f32 = jax.jit(functools.partial(upsample_forward, compute_dtype=None))(
        x, weight, bias)
    out_f32 = jax.block_until_ready(out_f32)
    assert out_f32.shape == (N, C, 2 * H, 2 * W), out_f32.shape
    np.testing.assert_allclose(np.asarray(out_f32), ref, rtol=1e-5, atol=1e-5)

    # Default bf16-compute path (f32 accumulation) - loose tolerance vs f32 ref.
    out_bf16 = jax.jit(upsample_forward)(x, weight, bias)
    out_bf16 = jax.block_until_ready(out_bf16)
    assert out_bf16.shape == (N, C, 2 * H, 2 * W), out_bf16.shape
    np.testing.assert_allclose(np.asarray(out_bf16), ref, rtol=5e-2, atol=1e-1)

    print("KERNEL_OK")
</pallas_src>

<mosaic_0001>
module attributes {stable_mosaic.version = 11 : i64} {
  func.func @_fused_upsample_conv_kernel(%arg0: i32, %arg1: memref<1x10x24x4xf32, #tpu.memory_space<vmem>>, %arg2: memref<16x4x4xf32, #tpu.memory_space<vmem>>, %arg3: memref<1x4xf32, #tpu.memory_space<vmem>>, %arg4: memref<1x8x32x8xf32, #tpu.memory_space<vmem>>) attributes {dimension_semantics = [#tpu.dimension_semantics<parallel>], iteration_bounds = array<i64: 4>, scalar_prefetch = 0 : i64, scratch_operands = 0 : i64, tpu.core_type = #tpu.core_type<tc>, window_params = [{transform_indices = @transform_0, window_bounds = array<i64: 1, 10, 24, 4>}, {pipeline_mode = #tpu.pipeline_mode<synchronous>, transform_indices = @transform_1, window_bounds = array<i64: 16, 4, 4>}, {pipeline_mode = #tpu.pipeline_mode<synchronous>, transform_indices = @transform_2, window_bounds = array<i64: 1, 4>}, {transform_indices = @transform_3, window_bounds = array<i64: 1, 8, 32, 8>}]} {
    %c0 = arith.constant 0 : index
    %c0_0 = arith.constant 0 : index
    %c0_1 = arith.constant 0 : index
    %c0_2 = arith.constant 0 : index
    %0 = vector.load %arg1[%c0, %c0_0, %c0_1, %c0_2] : memref<1x10x24x4xf32, #tpu.memory_space<vmem>>, vector<1x10x24x4xf32>
    %1 = vector.shape_cast %0 : vector<1x10x24x4xf32> to vector<10x24x4xf32>
    %c0_3 = arith.constant 0 : index
    %c0_4 = arith.constant 0 : index
    %2 = vector.load %arg3[%c0_3, %c0_4] : memref<1x4xf32, #tpu.memory_space<vmem>>, vector<1x4xf32>
    %3 = vector.shape_cast %2 : vector<1x4xf32> to vector<4xf32>
    %4 = vector.extract_strided_slice %1 {offsets = [0, 0, 0], sizes = [8, 16, 4], strides = [1, 1, 1]} : vector<10x24x4xf32> to vector<8x16x4xf32>
    %5 = vector.shape_cast %4 : vector<8x16x4xf32> to vector<128x4xf32>
    %6 = vector.extract_strided_slice %1 {offsets = [0, 1, 0], sizes = [8, 16, 4], strides = [1, 1, 1]} : vector<10x24x4xf32> to vector<8x16x4xf32>
    %7 = vector.shape_cast %6 : vector<8x16x4xf32> to vector<128x4xf32>
    %8 = vector.extract_strided_slice %1 {offsets = [0, 2, 0], sizes = [8, 16, 4], strides = [1, 1, 1]} : vector<10x24x4xf32> to vector<8x16x4xf32>
    %9 = vector.shape_cast %8 : vector<8x16x4xf32> to vector<128x4xf32>
    %10 = vector.extract_strided_slice %1 {offsets = [1, 0, 0], sizes = [8, 16, 4], strides = [1, 1, 1]} : vector<10x24x4xf32> to vector<8x16x4xf32>
    %11 = vector.shape_cast %10 : vector<8x16x4xf32> to vector<128x4xf32>
    %12 = vector.extract_strided_slice %1 {offsets = [1, 1, 0], sizes = [8, 16, 4], strides = [1, 1, 1]} : vector<10x24x4xf32> to vector<8x16x4xf32>
    %13 = vector.shape_cast %12 : vector<8x16x4xf32> to vector<128x4xf32>
    %14 = vector.extract_strided_slice %1 {offsets = [1, 2, 0], sizes = [8, 16, 4], strides = [1, 1, 1]} : vector<10x24x4xf32> to vector<8x16x4xf32>
    %15 = vector.shape_cast %14 : vector<8x16x4xf32> to vector<128x4xf32>
    %16 = vector.extract_strided_slice %1 {offsets = [2, 0, 0], sizes = [8, 16, 4], strides = [1, 1, 1]} : vector<10x24x4xf32> to vector<8x16x4xf32>
    %17 = vector.shape_cast %16 : vector<8x16x4xf32> to vector<128x4xf32>
    %18 = vector.extract_strided_slice %1 {offsets = [2, 1, 0], sizes = [8, 16, 4], strides = [1, 1, 1]} : vector<10x24x4xf32> to vector<8x16x4xf32>
    %19 = vector.shape_cast %18 : vector<8x16x4xf32> to vector<128x4xf32>
    %20 = vector.extract_strided_slice %1 {offsets = [2, 2, 0], sizes = [8, 16, 4], strides = [1, 1, 1]} : vector<10x24x4xf32> to vector<8x16x4xf32>
    %21 = vector.shape_cast %20 : vector<8x16x4xf32> to vector<128x4xf32>
    %cst = arith.constant 0.000000e+00 : f32
    %22 = vector.broadcast %cst : f32 to vector<128x4xf32>
    %c0_5 = arith.constant 0 : index
    %c0_6 = arith.constant 0 : index
    %c0_7 = arith.constant 0 : index
    %23 = vector.load %arg2[%c0_5, %c0_6, %c0_7] : memref<16x4x4xf32, #tpu.memory_space<vmem>>, vector<1x4x4xf32>
    %24 = vector.shape_cast %23 : vector<1x4x4xf32> to vector<4x4xf32>
    %cst_8 = arith.constant dense<0.000000e+00> : vector<128x4xf32>
    %25 = tpu.matmul %5, %24, %cst_8 {dimension_numbers = #tpu.dot_dimension_numbers<[1], [0], [0], [1], [0, 0, 1, 1], [], []>} : vector<128x4xf32>, vector<4x4xf32>, vector<128x4xf32> -> vector<128x4xf32>
    %26 = arith.addf %22, %25 : vector<128x4xf32>
    %c1 = arith.constant 1 : index
    %c0_9 = arith.constant 0 : index
    %c0_10 = arith.constant 0 : index
    %27 = vector.load %arg2[%c1, %c0_9, %c0_10] : memref<16x4x4xf32, #tpu.memory_space<vmem>>, vector<1x4x4xf32>
    %28 = vector.shape_cast %27 : vector<1x4x4xf32> to vector<4x4xf32>
    %cst_11 = arith.constant dense<0.000000e+00> : vector<128x4xf32>
    %29 = tpu.matmul %7, %28, %cst_11 {dimension_numbers = #tpu.dot_dimension_numbers<[1], [0], [0], [1], [0, 0, 1, 1], [], []>} : vector<128x4xf32>, vector<4x4xf32>, vector<128x4xf32> -> vector<128x4xf32>
    %30 = arith.addf %26, %29 : vector<128x4xf32>
    %c2 = arith.constant 2 : index
    %c0_12 = arith.constant 0 : index
    %c0_13 = arith.constant 0 : index
    %31 = vector.load %arg2[%c2, %c0_12, %c0_13] : memref<16x4x4xf32, #tpu.memory_space<vmem>>, vector<1x4x4xf32>
    %32 = vector.shape_cast %31 : vector<1x4x4xf32> to vector<4x4xf32>
    %cst_14 = arith.constant dense<0.000000e+00> : vector<128x4xf32>
    %33 = tpu.matmul %11, %32, %cst_14 {dimension_numbers = #tpu.dot_dimension_numbers<[1], [0], [0], [1], [0, 0, 1, 1], [], []>} : vector<128x4xf32>, vector<4x4xf32>, vector<128x4xf32> -> vector<128x4xf32>
    %34 = arith.addf %30, %33 : vector<128x4xf32>
    %c3 = arith.constant 3 : index
    %c0_15 = arith.constant 0 : index
    %c0_16 = arith.constant 0 : index
    %35 = vector.load %arg2[%c3, %c0_15, %c0_16] : memref<16x4x4xf32, #tpu.memory_space<vmem>>, vector<1x4x4xf32>
    %36 = vector.shape_cast %35 : vector<1x4x4xf32> to vector<4x4xf32>
    %cst_17 = arith.constant dense<0.000000e+00> : vector<128x4xf32>
    %37 = tpu.matmul %13, %36, %cst_17 {dimension_numbers = #tpu.dot_dimension_numbers<[1], [0], [0], [1], [0, 0, 1, 1], [], []>} : vector<128x4xf32>, vector<4x4xf32>, vector<128x4xf32> -> vector<128x4xf32>
    %38 = arith.addf %34, %37 : vector<128x4xf32>
    %39 = vector.shape_cast %3 : vector<4xf32> to vector<1x4xf32>
    %40 = vector.broadcast %39 : vector<1x4xf32> to vector<128x4xf32>
    %41 = arith.addf %38, %40 : vector<128x4xf32>
    %42 = vector.shape_cast %41 : vector<128x4xf32> to vector<8x16x4xf32>
    %c0_18 = arith.constant 0 : index
    %c0_19 = arith.constant 0 : index
    %c0_20 = arith.constant 0 : index
    %c0_21 = arith.constant 0 : index
    %43 = vector.load %arg4[%c0_18, %c0_19, %c0_20, %c0_21] : memref<1x8x32x8xf32, #tpu.memory_space<vmem>>, vector<1x8x16x4xf32>
    %44 = vector.shape_cast %43 : vector<1x8x16x4xf32> to vector<8x16x4xf32>
    %45 = vector.shape_cast %42 : vector<8x16x4xf32> to vector<1x8x16x4xf32>
    tpu.vector_store %arg4[%c0_18, %c0_19, %c0_20, %c0_21], %45 {strides = array<i32>} : memref<1x8x32x8xf32, #tpu.memory_space<vmem>>, vector<1x8x16x4xf32>,
    %cst_22 = arith.constant 0.000000e+00 : f32
    %46 = vector.broadcast %cst_22 : f32 to vector<128x4xf32>
    %c4 = arith.constant 4 : index
    %c0_23 = arith.constant 0 : index
    %c0_24 = arith.constant 0 : index
    %47 = vector.load %arg2[%c4, %c0_23, %c0_24] : memref<16x4x4xf32, #tpu.memory_space<vmem>>, vector<1x4x4xf32>
    %48 = vector.shape_cast %47 : vector<1x4x4xf32> to vector<4x4xf32>
    %cst_25 = arith.constant dense<0.000000e+00> : vector<128x4xf32>
    %49 = tpu.matmul %7, %48, %cst_25 {dimension_numbers = #tpu.dot_dimension_numbers<[1], [0], [0], [1], [0, 0, 1, 1], [], []>} : vector<128x4xf32>, vector<4x4xf32>, vector<128x4xf32> -> vector<128x4xf32>
    %50 = arith.addf %46, %49 : vector<128x4xf32>
    %c5 = arith.constant 5 : index
    %c0_26 = arith.constant 0 : index
    %c0_27 = arith.constant 0 : index
    %51 = vector.load %arg2[%c5, %c0_26, %c0_27] : memref<16x4x4xf32, #tpu.memory_space<vmem>>, vector<1x4x4xf32>
    %52 = vector.shape_cast %51 : vector<1x4x4xf32> to vector<4x4xf32>
    %cst_28 = arith.constant dense<0.000000e+00> : vector<128x4xf32>
    %53 = tpu.matmul %9, %52, %cst_28 {dimension_numbers = #tpu.dot_dimension_numbers<[1], [0], [0], [1], [0, 0, 1, 1], [], []>} : vector<128x4xf32>, vector<4x4xf32>, vector<128x4xf32> -> vector<128x4xf32>
    %54 = arith.addf %50, %53 : vector<128x4xf32>
    %c6 = arith.constant 6 : index
    %c0_29 = arith.constant 0 : index
    %c0_30 = arith.constant 0 : index
    %55 = vector.load %arg2[%c6, %c0_29, %c0_30] : memref<16x4x4xf32, #tpu.memory_space<vmem>>, vector<1x4x4xf32>
    %56 = vector.shape_cast %55 : vector<1x4x4xf32> to vector<4x4xf32>
    %cst_31 = arith.constant dense<0.000000e+00> : vector<128x4xf32>
    %57 = tpu.matmul %13, %56, %cst_31 {dimension_numbers = #tpu.dot_dimension_numbers<[1], [0], [0], [1], [0, 0, 1, 1], [], []>} : vector<128x4xf32>, vector<4x4xf32>, vector<128x4xf32> -> vector<128x4xf32>
    %58 = arith.addf %54, %57 : vector<128x4xf32>
    %c7 = arith.constant 7 : index
    %c0_32 = arith.constant 0 : index
    %c0_33 = arith.constant 0 : index
    %59 = vector.load %arg2[%c7, %c0_32, %c0_33] : memref<16x4x4xf32, #tpu.memory_space<vmem>>, vector<1x4x4xf32>
    %60 = vector.shape_cast %59 : vector<1x4x4xf32> to vector<4x4xf32>
    %cst_34 = arith.constant dense<0.000000e+00> : vector<128x4xf32>
    %61 = tpu.matmul %15, %60, %cst_34 {dimension_numbers = #tpu.dot_dimension_numbers<[1], [0], [0], [1], [0, 0, 1, 1], [], []>} : vector<128x4xf32>, vector<4x4xf32>, vector<128x4xf32> -> vector<128x4xf32>
    %62 = arith.addf %58, %61 : vector<128x4xf32>
    %63 = vector.shape_cast %3 : vector<4xf32> to vector<1x4xf32>
    %64 = vector.broadcast %63 : vector<1x4xf32> to vector<128x4xf32>
    %65 = arith.addf %62, %64 : vector<128x4xf32>
    %66 = vector.shape_cast %65 : vector<128x4xf32> to vector<8x16x4xf32>
    %c0_35 = arith.constant 0 : index
    %c0_36 = arith.constant 0 : index
    %c0_37 = arith.constant 0 : index
    %c4_38 = arith.constant 4 : index
    %67 = vector.load %arg4[%c0_35, %c0_36, %c0_37, %c4_38] : memref<1x8x32x8xf32, #tpu.memory_space<vmem>>, vector<1x8x16x4xf32>
    %68 = vector.shape_cast %67 : vector<1x8x16x4xf32> to vector<8x16x4xf32>
    %69 = vector.shape_cast %66 : vector<8x16x4xf32> to vector<1x8x16x4xf32>
    tpu.vector_store %arg4[%c0_35, %c0_36, %c0_37, %c4_38], %69 {strides = array<i32>} : memref<1x8x32x8xf32, #tpu.memory_space<vmem>>, vector<1x8x16x4xf32>,
    %cst_39 = arith.constant 0.000000e+00 : f32
    %70 = vector.broadcast %cst_39 : f32 to vector<128x4xf32>
    %c8 = arith.constant 8 : index
    %c0_40 = arith.constant 0 : index
    %c0_41 = arith.constant 0 : index
    %71 = vector.load %arg2[%c8, %c0_40, %c0_41] : memref<16x4x4xf32, #tpu.memory_space<vmem>>, vector<1x4x4xf32>
    %72 = vector.shape_cast %71 : vector<1x4x4xf32> to vector<4x4xf32>
    %cst_42 = arith.constant dense<0.000000e+00> : vector<128x4xf32>
    %73 = tpu.matmul %11, %72, %cst_42 {dimension_numbers = #tpu.dot_dimension_numbers<[1], [0], [0], [1], [0, 0, 1, 1], [], []>} : vector<128x4xf32>, vector<4x4xf32>, vector<128x4xf32> -> vector<128x4xf32>
    %74 = arith.addf %70, %73 : vector<128x4xf32>
    %c9 = arith.constant 9 : index
    %c0_43 = arith.constant 0 : index
    %c0_44 = arith.constant 0 : index
    %75 = vector.load %arg2[%c9, %c0_43, %c0_44] : memref<16x4x4xf32, #tpu.memory_space<vmem>>, vector<1x4x4xf32>
    %76 = vector.shape_cast %75 : vector<1x4x4xf32> to vector<4x4xf32>
    %cst_45 = arith.constant dense<0.000000e+00> : vector<128x4xf32>
    %77 = tpu.matmul %13, %76, %cst_45 {dimension_numbers = #tpu.dot_dimension_numbers<[1], [0], [0], [1], [0, 0, 1, 1], [], []>} : vector<128x4xf32>, vector<4x4xf32>, vector<128x4xf32> -> vector<128x4xf32>
    %78 = arith.addf %74, %77 : vector<128x4xf32>
    %c10 = arith.constant 10 : index
    %c0_46 = arith.constant 0 : index
    %c0_47 = arith.constant 0 : index
    %79 = vector.load %arg2[%c10, %c0_46, %c0_47] : memref<16x4x4xf32, #tpu.memory_space<vmem>>, vector<1x4x4xf32>
    %80 = vector.shape_cast %79 : vector<1x4x4xf32> to vector<4x4xf32>
    %cst_48 = arith.constant dense<0.000000e+00> : vector<128x4xf32>
    %81 = tpu.matmul %17, %80, %cst_48 {dimension_numbers = #tpu.dot_dimension_numbers<[1], [0], [0], [1], [0, 0, 1, 1], [], []>} : vector<128x4xf32>, vector<4x4xf32>, vector<128x4xf32> -> vector<128x4xf32>
    %82 = arith.addf %78, %81 : vector<128x4xf32>
    %c11 = arith.constant 11 : index
    %c0_49 = arith.constant 0 : index
    %c0_50 = arith.constant 0 : index
    %83 = vector.load %arg2[%c11, %c0_49, %c0_50] : memref<16x4x4xf32, #tpu.memory_space<vmem>>, vector<1x4x4xf32>
    %84 = vector.shape_cast %83 : vector<1x4x4xf32> to vector<4x4xf32>
    %cst_51 = arith.constant dense<0.000000e+00> : vector<128x4xf32>
    %85 = tpu.matmul %19, %84, %cst_51 {dimension_numbers = #tpu.dot_dimension_numbers<[1], [0], [0], [1], [0, 0, 1, 1], [], []>} : vector<128x4xf32>, vector<4x4xf32>, vector<128x4xf32> -> vector<128x4xf32>
    %86 = arith.addf %82, %85 : vector<128x4xf32>
    %87 = vector.shape_cast %3 : vector<4xf32> to vector<1x4xf32>
    %88 = vector.broadcast %87 : vector<1x4xf32> to vector<128x4xf32>
    %89 = arith.addf %86, %88 : vector<128x4xf32>
    %90 = vector.shape_cast %89 : vector<128x4xf32> to vector<8x16x4xf32>
    %c0_52 = arith.constant 0 : index
    %c0_53 = arith.constant 0 : index
    %c16 = arith.constant 16 : index
    %c0_54 = arith.constant 0 : index
    %91 = vector.load %arg4[%c0_52, %c0_53, %c16, %c0_54] : memref<1x8x32x8xf32, #tpu.memory_space<vmem>>, vector<1x8x16x4xf32>
    %92 = vector.shape_cast %91 : vector<1x8x16x4xf32> to vector<8x16x4xf32>
    %93 = vector.shape_cast %90 : vector<8x16x4xf32> to vector<1x8x16x4xf32>
    tpu.vector_store %arg4[%c0_52, %c0_53, %c16, %c0_54], %93 {strides = array<i32>} : memref<1x8x32x8xf32, #tpu.memory_space<vmem>>, vector<1x8x16x4xf32>,
    %cst_55 = arith.constant 0.000000e+00 : f32
    %94 = vector.broadcast %cst_55 : f32 to vector<128x4xf32>
    %c12 = arith.constant 12 : index
    %c0_56 = arith.constant 0 : index
    %c0_57 = arith.constant 0 : index
    %95 = vector.load %arg2[%c12, %c0_56, %c0_57] : memref<16x4x4xf32, #tpu.memory_space<vmem>>, vector<1x4x4xf32>
    %96 = vector.shape_cast %95 : vector<1x4x4xf32> to vector<4x4xf32>
    %cst_58 = arith.constant dense<0.000000e+00> : vector<128x4xf32>
    %97 = tpu.matmul %13, %96, %cst_58 {dimension_numbers = #tpu.dot_dimension_numbers<[1], [0], [0], [1], [0, 0, 1, 1], [], []>} : vector<128x4xf32>, vector<4x4xf32>, vector<128x4xf32> -> vector<128x4xf32>
    %98 = arith.addf %94, %97 : vector<128x4xf32>
    %c13 = arith.constant 13 : index
    %c0_59 = arith.constant 0 : index
    %c0_60 = arith.constant 0 : index
    %99 = vector.load %arg2[%c13, %c0_59, %c0_60] : memref<16x4x4xf32, #tpu.memory_space<vmem>>, vector<1x4x4xf32>
    %100 = vector.shape_cast %99 : vector<1x4x4xf32> to vector<4x4xf32>
    %cst_61 = arith.constant dense<0.000000e+00> : vector<128x4xf32>
    %101 = tpu.matmul %15, %100, %cst_61 {dimension_numbers = #tpu.dot_dimension_numbers<[1], [0], [0], [1], [0, 0, 1, 1], [], []>} : vector<128x4xf32>, vector<4x4xf32>, vector<128x4xf32> -> vector<128x4xf32>
    %102 = arith.addf %98, %101 : vector<128x4xf32>
    %c14 = arith.constant 14 : index
    %c0_62 = arith.constant 0 : index
    %c0_63 = arith.constant 0 : index
    %103 = vector.load %arg2[%c14, %c0_62, %c0_63] : memref<16x4x4xf32, #tpu.memory_space<vmem>>, vector<1x4x4xf32>
    %104 = vector.shape_cast %103 : vector<1x4x4xf32> to vector<4x4xf32>
    %cst_64 = arith.constant dense<0.000000e+00> : vector<128x4xf32>
    %105 = tpu.matmul %19, %104, %cst_64 {dimension_numbers = #tpu.dot_dimension_numbers<[1], [0], [0], [1], [0, 0, 1, 1], [], []>} : vector<128x4xf32>, vector<4x4xf32>, vector<128x4xf32> -> vector<128x4xf32>
    %106 = arith.addf %102, %105 : vector<128x4xf32>
    %c15 = arith.constant 15 : index
    %c0_65 = arith.constant 0 : index
    %c0_66 = arith.constant 0 : index
    %107 = vector.load %arg2[%c15, %c0_65, %c0_66] : memref<16x4x4xf32, #tpu.memory_space<vmem>>, vector<1x4x4xf32>
    %108 = vector.shape_cast %107 : vector<1x4x4xf32> to vector<4x4xf32>
    %cst_67 = arith.constant dense<0.000000e+00> : vector<128x4xf32>
    %109 = tpu.matmul %21, %108, %cst_67 {dimension_numbers = #tpu.dot_dimension_numbers<[1], [0], [0], [1], [0, 0, 1, 1], [], []>} : vector<128x4xf32>, vector<4x4xf32>, vector<128x4xf32> -> vector<128x4xf32>
    %110 = arith.addf %106, %109 : vector<128x4xf32>
    %111 = vector.shape_cast %3 : vector<4xf32> to vector<1x4xf32>
    %112 = vector.broadcast %111 : vector<1x4xf32> to vector<128x4xf32>
    %113 = arith.addf %110, %112 : vector<128x4xf32>
    %114 = vector.shape_cast %113 : vector<128x4xf32> to vector<8x16x4xf32>
    %c0_68 = arith.constant 0 : index
    %c0_69 = arith.constant 0 : index
    %c16_70 = arith.constant 16 : index
    %c4_71 = arith.constant 4 : index
    %115 = vector.load %arg4[%c0_68, %c0_69, %c16_70, %c4_71] : memref<1x8x32x8xf32, #tpu.memory_space<vmem>>, vector<1x8x16x4xf32>
    %116 = vector.shape_cast %115 : vector<1x8x16x4xf32> to vector<8x16x4xf32>
    %117 = vector.shape_cast %114 : vector<8x16x4xf32> to vector<1x8x16x4xf32>
    tpu.vector_store %arg4[%c0_68, %c0_69, %c16_70, %c4_71], %117 {strides = array<i32>} : memref<1x8x32x8xf32, #tpu.memory_space<vmem>>, vector<1x8x16x4xf32>,
    return
  }
  func.func @transform_0(%arg0: i32) -> (i32, i32, i32, i32) {
    %c0_i32 = arith.constant 0 : i32
    %c0_i32_0 = arith.constant 0 : i32
    %c0_i32_1 = arith.constant 0 : i32
    %c0_i32_2 = arith.constant 0 : i32
    return %arg0, %c0_i32, %c0_i32_0, %c0_i32_1 : i32, i32, i32, i32
  }
  func.func @transform_1(%arg0: i32) -> (i32, i32, i32) {
    %c0_i32 = arith.constant 0 : i32
    %c0_i32_0 = arith.constant 0 : i32
    %c0_i32_1 = arith.constant 0 : i32
    %c0_i32_2 = arith.constant 0 : i32
    return %c0_i32, %c0_i32_0, %c0_i32_1 : i32, i32, i32
  }
  func.func @transform_2(%arg0: i32) -> (i32, i32) {
    %c0_i32 = arith.constant 0 : i32
    %c0_i32_0 = arith.constant 0 : i32
    %c0_i32_1 = arith.constant 0 : i32
    return %c0_i32, %c0_i32_0 : i32, i32
  }
  func.func @transform_3(%arg0: i32) -> (i32, i32, i32, i32) {
    %c0_i32 = arith.constant 0 : i32
    %c0_i32_0 = arith.constant 0 : i32
    %c0_i32_1 = arith.constant 0 : i32
    %c0_i32_2 = arith.constant 0 : i32
    return %arg0, %c0_i32, %c0_i32_0, %c0_i32_1 : i32, i32, i32, i32
  }
}

</mosaic_0001>

<bundles_post_ra>
// kernel: upsample_forward.1
= control target key start
LH: loop header
LB: loop body
LE: loop exit
PB: predicated region body
PF: predicated region fallthrough
CT: control target
= control target key end

     0   :  { %s4519_s12 = smov 0   ;;  %s5589_s0 = inlined_call_operand.vmem [shape: f32[4,10,24,4], index: 0, kind: input, shape index: {}]   ;;  %s5590_s1 = inlined_call_operand.vmem [shape: f32[16,4,4], index: 1, kind: input, shape index: {}]   ;;  %s5591_s2 = inlined_call_operand.vmem [shape: f32[1,4], index: 2, kind: input, shape index: {}]   ;;  %s5592_s3 = inlined_call_operand.vmem [shape: f32[4,8,32,8], index: 3, kind: output, shape index: {}]  }
   0x1 LB: > { %s3301_s13 = sadd.s32 4294967295, %s4496_s12   ;;  %p3305_p0 = scmp.ge.s32.totalorder %s4496_s12, 1  ;;  %s4496_s12 = sphi %s4519_s12, %s13_s12  }
   0x2   : > { %p137_p1 = scmp.lt.s32.totalorder %s4496_s12, 5 }
   0x4   : > { %p138_p2 = pnand %p3305_p0, %p137_p1 }
   0x5   : > { %vm370_vm0 = vcmask (!%p138_p2), 1043456   ;;  %v3382_v0 = vld [vmem:[%s5590_s1 + $0x14] sm:$0xf] (!%p138_p2)  ;;  %p161_p3 = scmp.lt.s32.totalorder (!%p138_p2), %s3301_s13, 3  ;;  %v3381_v1 = vld [vmem:[%s5590_s1 + $0x10] sm:$0xf] (!%p138_p2) }
   0x6   : > { %141 = sbr.rel (%p138_p2) target bundleno = 605 (0x25d), region = 32  ;;  %3976 = vmatprep.subr.msk.mxu1 (!%p138_p2), %vm370_vm0, %v3382_v0  ;;  %v3309_v2 = vld [vmem:[%s5590_s1 + $0x4] sm:$0xf] (!%p138_p2)  ;;  %v4544_v3 = vld [vmem:[%s5590_s1] sm:$0xf] (!%p138_p2)  ;;  %vm267_vm1 = vcmask (!%p138_p2), 1045504  }
   0x7   : > { %3977 = vmatpush3.msk.msra.mxu1 (!%p138_p2), %vm370_vm0, %v3382_v0  ;;  %3872 = vmatprep.subr.msk.mxu0 (!%p138_p2), %vm370_vm0, %v3309_v2  ;;  %vm337_vm2 = vcmask (!%p138_p2), 31744   ;;  %v4600_v26 = vld [vmem:[%s5590_s1 + $0x18] sm:$0xf] (!%p138_p2)  ;;  %vm226_vm3 = vcmask (!%p138_p2), 1046528   ;;  %v4676_v56 = vld [vmem:[%s5590_s1 + $0x8] sm:$0xf] (!%p138_p2) }
   0x8   : > { %4002 = vmatprep.subr.msk.mxu1 (!%p138_p2), %vm370_vm0, %v3381_v1  ;;  %3873 = vmatpush3.msk.msra.mxu0 (!%p138_p2), %vm370_vm0, %v3309_v2  ;;  %s4498_s27 = smov (!%p138_p2), 4   ;;  %vm1825_vm4 = vcmask (!%p138_p2), 64544  }
   0x9   : > { %3898 = vmatprep.subr.msk.mxu0 (!%p138_p2), %vm370_vm0, %v4544_v3 }
   0xd   : > { %s5594_s13 = smov (!%p161_p3, %s3301_s13), 3 }
   0xe   : > { %s4480_s22 = smul.u32 240, %s5594_s13  ;;  %s3599_s28 = sshll.u32 %s5594_s13, 8 }
   0xf   : > { %s5366_s4 = scalar_lea.vmem %s5592_s3, %s3599_s28 }
  0x10   : > { %s4554_s25 = scalar_lea.vmem %s5589_s0, %s4480_s22 }
  0x11   : > { %v4557_v4 = vld [vmem:[%s4554_s25] sm:$0xff]  ;;  %v4560_v5 = vld [vmem:[%s4554_s25 + $0x8] sm:$0xff]  ;;  %v173_v6 = vld [vmem:[%s4554_s25 + $0x10] sm:$0xff] }
  0x12   : > { %v268_v7 = vrot.slane %v4557_v4, 2  ;;  %v269_v8 = vrot.slane %v4560_v5, 2  ;;  %v271_v9 = vrot.slane %v173_v6, 2  ;;  %v4566_v10 = vld [vmem:[%s4554_s25 + $0x18] sm:$0xff]  ;;  %v4569_v11 = vld [vmem:[%s4554_s25 + $0x20] sm:$0xff]  ;;  %v176_v12 = vld [vmem:[%s4554_s25 + $0x28] sm:$0xff] }
  0x13   : > { %v273_v13 = vrot.slane %v4566_v10, 2  ;;  %v274_v14 = vrot.slane %v4569_v11, 2  ;;  %v276_v15 = vrot.slane %v176_v12, 2  ;;  %v4575_v16 = vld [vmem:[%s4554_s25 + $0x30] sm:$0xff]  ;;  %v4578_v17 = vld [vmem:[%s4554_s25 + $0x38] sm:$0xff]  ;;  %v4585_v22 = vld [vmem:[%s4554_s25 + $0x40] sm:$0xff] }
  0x14   : > { %v270_v18 = vsel %vm267_vm1, %v268_v7, %v269_v8  ;;  %v272_v19 = vsel %vm267_vm1, %v269_v8, %v271_v9  ;;  %v278_v20 = vrot.slane %v4575_v16, 2  ;;  %v279_v21 = vrot.slane %v4578_v17, 2  ;;  %v4588_v23 = vld [vmem:[%s4554_s25 + $0x48] sm:$0xff]  ;;  %v4591_v24 = vld [vmem:[%s4554_s25 + $0x50] sm:$0xff]  ;;  %v4613_v31 = vld [vmem:[%s4554_s25 + $0x58] sm:$0xff] }
  0x15   : > { %3978 = vmatprep.mubr.msk.f32.mxu1 %vm337_vm2, %v270_v18  ;;  %v4595_v25 = vsel %vm267_vm1, %v273_v13, %v274_v14  ;;  %v4607_v27 = vsel %vm267_vm1, %v274_v14, %v276_v15  ;;  %v281_v28 = vrot.slane %v4585_v22, 2  ;;  %v283_v29 = vrot.slane %v4588_v23, 2  ;;  %v4621_v33 = vld [vmem:[%s4554_s25 + $0x60] sm:$0xff]  ;;  %v4624_v34 = vld [vmem:[%s4554_s25 + $0x68] sm:$0xff]  ;;  %v4643_v42 = vld [vmem:[%s4554_s25 + $0x70] sm:$0xff] }
  0x16   : > { %3979 = vmatmul.mubr.msk.f32.vlgmr.msra.gmra.mrb[0].mxu1 %vm337_vm2, %v272_v19  ;;  %v284_v30 = vrot.slane %v4591_v24, 2  ;;  %v4616_v32 = vsel %vm267_vm1, %v278_v20, %v279_v21  ;;  %v227_v35 = vrot.slane %v4557_v4, 1  ;;  %v228_v36 = vrot.slane %v4560_v5, 1  ;;  %v4650_v46 = vld [vmem:[%s4554_s25 + $0x78] sm:$0xff]  ;;  %v4653_v47 = vld [vmem:[%s4554_s25 + $0x80] sm:$0xff]  ;;  %v188_v63 = vld [vmem:[%s4554_s25 + $0x88] sm:$0xff] }
  0x17   : > { %4003 = vmatpush3.msk.msra.mxu1 %vm370_vm0, %v3381_v1  ;;  %3981 = vmatprep.mubr.msk.f32.mxu1 %vm337_vm2, %v4595_v25  ;;  %v235_v37 = vrot.slane %v176_v12, 1  ;;  %v286_v38 = vrot.slane %v4613_v31, 2  ;;  %v4634_v39 = vsel %vm267_vm1, %v279_v21, %v281_v28  ;;  %v230_v43 = vrot.slane %v173_v6, 1  ;;  %v4696_v0 = vld [vmem:[%s4554_s25 + $0x90] sm:$0xff]  ;;  %v4699_v1 = vld [vmem:[%s4554_s25 + $0x98] sm:$0xff]  ;;  %v191_v18 = vld [vmem:[%s4554_s25 + $0xa0] sm:$0xff] }
  0x18   : > { %4028 = vmatprep.subr.msk.mxu1 %vm370_vm0, %v4600_v26  ;;  %v4637_v40 = vsel %vm267_vm1, %v283_v29, %v284_v30  ;;  %v4640_v41 = vsel %vm226_vm3, %v227_v35, %v228_v36  ;;  %v288_v44 = vrot.slane %v4621_v33, 2  ;;  %v289_v45 = vrot.slane %v4624_v34, 2  ;;  %v4730_v19 = vld [vmem:[%s4554_s25 + $0xa8] sm:$0xff] }
  0x19   : > { %3874 = vmatprep.mubr.msk.f32.mxu0 %vm337_vm2, %v4640_v41  ;;  %v232_v48 = vrot.slane %v4566_v10, 1  ;;  %v233_v49 = vrot.slane %v4569_v11, 1  ;;  %v238_v50 = vrot.slane %v4578_v17, 1  ;;  %v4659_v51 = vsel %vm226_vm3, %v228_v36, %v230_v43 }
  0x1a   : > { %3982 = vmatmul.mubr.msk.f32.gmra.mrb[2].mxu1 %vm337_vm2, %v4607_v27  ;;  %v240_v52 = vrot.slane %v4585_v22, 1  ;;  %v4665_v53 = vsel %vm267_vm1, %v284_v30, %v286_v38  ;;  %v291_v54 = vrot.slane %v4643_v42, 2  ;;  %3875 = vmatmul.mubr.msk.f32.vlgmr.msra.gmra.mrb[0].mxu0 %vm337_vm2, %v4659_v51  ;;  %v293_v57 = vrot.slane %v4650_v46, 2  ;;  %v4737_v22 = vld [vmem:[%s4554_s25 + $0xb0] sm:$0xff] }
  0x1b   : > { %3984 = vmatprep.mubr.msk.f32.mxu1 %vm337_vm2, %v4616_v32  ;;  %v4671_v55 = vsel %vm226_vm3, %v232_v48, %v233_v49  ;;  %v294_v58 = vrot.slane %v4653_v47, 2  ;;  %v4685_v59 = vsel %vm226_vm3, %v233_v49, %v235_v37  ;;  %v237_v60 = vrot.slane %v4575_v16, 1  ;;  %3899 = vmatpush3.msk.msra.mxu0 %vm370_vm0, %v4544_v3 }
  0x1c   : > { %3877 = vmatprep.mubr.msk.f32.mxu0 %vm337_vm2, %v4671_v55  ;;  %v243_v61 = vrot.slane %v4591_v24, 1  ;;  %v4690_v62 = vsel %vm267_vm1, %v288_v44, %v289_v45  ;;  %v242_v6 = vrot.slane %v4588_v23, 1  ;;  %3924 = vmatprep.subr.msk.mxu0 %vm370_vm0, %v4676_v56  ;;  %v4708_v7 = vsel %vm226_vm3, %v238_v50, %v240_v52 }
  0x1d   : > { %v4702_v2 = vsel %vm226_vm3, %v237_v60, %v238_v50  ;;  %v245_v3 = vrot.slane %v4613_v31, 1  ;;  %v248_v8 = vrot.slane %v4624_v34, 1  ;;  %v4719_v9 = vsel %vm267_vm1, %v289_v45, %v291_v54 }
  0x1e   : > { %3985 = vmatmul.mubr.msk.f32.gmra.mrb[4].mxu1 %vm337_vm2, %v4634_v39  ;;  %3878 = vmatmul.mubr.msk.f32.gmra.mrb[2].mxu0 %vm337_vm2, %v4685_v59  ;;  %v4722_v12 = vsel %vm267_vm1, %v293_v57, %v294_v58  ;;  %v296_v13 = vrot.slane %v188_v63, 2  ;;  %v298_v14 = vrot.slane %v4696_v0, 2  ;;  %v299_v15 = vrot.slane %v4699_v1, 2 }
  0x1f   : > { %3987 = vmatprep.mubr.msk.f32.mxu1 %vm337_vm2, %v4637_v40  ;;  %3880 = vmatprep.mubr.msk.f32.mxu0 %vm337_vm2, %v4702_v2  ;;  %v4733_v20 = vsel %vm226_vm3, %v242_v6, %v243_v61  ;;  %v247_v21 = vrot.slane %v4621_v33, 1  ;;  %v4740_v28 = vsel %vm226_vm3, %v243_v61, %v245_v3  ;;  %v250_v29 = vrot.slane %v4643_v42, 1  ;;  %v194_v42 = vld [vmem:[%s4554_s25 + $0xb8] sm:$0xff] }
  0x20   : > { %v253_v30 = vrot.slane %v4653_v47, 1  ;;  %v4751_v31 = vsel %vm267_vm1, %v294_v58, %v296_v13  ;;  %v301_v35 = vrot.slane %v191_v18, 2  ;;  %v303_v36 = vrot.slane %v4730_v19, 2 }
  0x21   : > { %v4757_v37 = vsel %vm267_vm1, %v298_v14, %v299_v15  ;;  %v304_v38 = vrot.slane %v4737_v22, 2  ;;  %v4762_v43 = vsel %vm226_vm3, %v247_v21, %v248_v8  ;;  %v252_v44 = vrot.slane %v4650_v46, 1 }
  0x22   : > { %3988 = vmatmul.mubr.msk.f32.gmra.mrb[6].mxu1 %vm337_vm2, %v4665_v53  ;;  %3881 = vmatmul.mubr.msk.f32.gmra.mrb[4].mxu0 %vm337_vm2, %v4708_v7  ;;  %v4770_v45 = vsel %vm226_vm3, %v248_v8, %v250_v29  ;;  %v255_v48 = vrot.slane %v188_v63, 1  ;;  %v4775_v49 = vsel %vm267_vm1, %v299_v15, %v301_v35  ;;  %v306_v50 = vrot.slane %v194_v42, 2 }
  0x23   : > { %3990 = vmatprep.mubr.msk.f32.mxu1 %vm337_vm2, %v4690_v62  ;;  %3883 = vmatprep.mubr.msk.f32.mxu0 %vm337_vm2, %v4733_v20  ;;  %v258_v52 = vrot.slane %v4699_v1, 1  ;;  %v4781_v54 = vsel %vm267_vm1, %v303_v36, %v304_v38  ;;  %v4784_v57 = vsel %vm226_vm3, %v252_v44, %v253_v30  ;;  %v257_v58 = vrot.slane %v4696_v0, 1  ;;  %v3453_v44 = vld [vmem:[%s5590_s1 + $0x20] sm:$0xf] }
  0x24   : > { %v4792_v60 = vsel %vm226_vm3, %v253_v30, %v255_v48  ;;  %v260_v61 = vrot.slane %v191_v18, 1  ;;  %v4797_v63 = vsel %vm267_vm1, %v304_v38, %v306_v50  ;;  %v263_v3 = vrot.slane %v4737_v22, 1  ;;  %v3435_v18 = vld [vmem:[%s5590_s1 + $0x1c] sm:$0xf]  ;;  %v197_v30 = vld [vmem:[%s4554_s25 + $0xd0] sm:$0xff] }
  0x25   : > { %v4802_v6 = vsel %vm226_vm3, %v257_v58, %v258_v52  ;;  %v262_v8 = vrot.slane %v4730_v19, 1  ;;  %v265_v14 = vrot.slane %v194_v42, 1  ;;  %v314_v35 = vrot.slane %v197_v30, 1  ;;  %v3525_v42 = vld [vmem:[%s5590_s1 + $0x30] sm:$0xf] }
  0x26   : > { %3991 = vmatmul.mubr.msk.f32.gmra.mrb[8].mxu1 %vm337_vm2, %v4719_v9  ;;  %3884 = vmatmul.mubr.msk.f32.gmra.mrb[6].mxu0 %vm337_vm2, %v4740_v28  ;;  %v4811_v13 = vsel %vm226_vm3, %v258_v52, %v260_v61  ;;  %v319_v52 = vrot.slane %v197_v30, 2 }
  0x27   : > { %3993 = vmatprep.mubr.msk.f32.mxu1 %vm337_vm2, %v4722_v12  ;;  %3886 = vmatprep.mubr.msk.f32.mxu0 %vm337_vm2, %v4762_v43  ;;  %v4818_v15 = vsel %vm226_vm3, %v262_v8, %v263_v3  ;;  %v4828_v21 = vsel %vm226_vm3, %v263_v3, %v265_v14  ;;  %v3561_v3 = vld [vmem:[%s5590_s1 + $0x38] sm:$0xf] }
  0x2a   : > { %3994 = vmatmul.mubr.msk.f32.gmra.mrb[10].mxu1 %vm337_vm2, %v4751_v31  ;;  %3887 = vmatmul.mubr.msk.f32.gmra.mrb[8].mxu0 %vm337_vm2, %v4770_v45 }
  0x2b   : > { %3996 = vmatprep.mubr.msk.f32.mxu1 %vm337_vm2, %v4757_v37  ;;  %3889 = vmatprep.mubr.msk.f32.mxu0 %vm337_vm2, %v4784_v57 }
  0x2e   : > { %3997 = vmatmul.mubr.msk.f32.gmra.mrb[12].mxu1 %vm337_vm2, %v4775_v49  ;;  %3890 = vmatmul.mubr.msk.f32.gmra.mrb[10].mxu0 %vm337_vm2, %v4792_v60 }
  0x2f   : > { %3999 = vmatprep.mubr.msk.f32.mxu1 %vm337_vm2, %v4781_v54  ;;  %3892 = vmatprep.mubr.msk.f32.mxu0 %vm337_vm2, %v4802_v6 }
  0x32   : > { %4000 = vmatmul.mubr.msk.f32.gmra.mrb[14].mxu1 %vm337_vm2, %v4797_v63  ;;  %3893 = vmatmul.mubr.msk.f32.gmra.mrb[12].mxu0 %vm337_vm2, %v4811_v13 }
  0x33   : > { %4004 = vmatprep.mubr.msk.f32.mxu1 %vm337_vm2, %v4640_v41  ;;  %3895 = vmatprep.mubr.msk.f32.mxu0 %vm337_vm2, %v4818_v15  ;;  %v4942_v41 = vld [vmem:[%s4554_s25 + $0xc0] sm:$0xff] }
  0x34   : > { %v316_v48 = vrot.slane %v4942_v41, 2 }
  0x36   : > { %4005 = vmatmul.mubr.msk.f32.vlgmr.msra.gmra.mrb[0].mxu1 %vm337_vm2, %v4659_v51  ;;  %3896 = vmatmul.mubr.msk.f32.gmra.mrb[14].mxu0 %vm337_vm2, %v4828_v21  ;;  %v4945_v51 = vld [vmem:[%s4554_s25 + $0xc8] sm:$0xff] }
  0x37   : > { %4029 = vmatpush3.msk.msra.mxu1 %vm370_vm0, %v4600_v26  ;;  %4007 = vmatprep.mubr.msk.f32.mxu1 %vm337_vm2, %v4671_v55  ;;  %v3362_v26 = vld [vmem:[%s5590_s1 + $0xc] sm:$0xf]  ;;  %v312_v29 = vrot.slane %v4945_v51, 1  ;;  %v317_v50 = vrot.slane %v4945_v51, 2 }
  0x38   : > { %4054 = vmatprep.subr.msk.mxu1 %vm370_vm0, %v3435_v18  ;;  %3900 = vmatprep.mubr.msk.f32.mxu0 %vm337_vm2, %v4557_v4  ;;  %v3526_v4 = vld [vmem:[%s5590_s1 + $0x34] sm:$0xf] }
  0x39   : > { %v4976_v38 = vsel %vm226_vm3, %v312_v29, %v314_v35  ;;  %v5049_v58 = vsel %vm267_vm1, %v316_v48, %v317_v50  ;;  %v5058_v61 = vsel %vm267_vm1, %v317_v50, %v319_v52 }
  0x3a   : > { %4008 = vmatmul.mubr.msk.f32.gmra.mrb[2].mxu1 %vm337_vm2, %v4685_v59  ;;  %3901 = vmatmul.mubr.msk.f32.vlgmr.msra.gmra.mrb[0].mxu0 %vm337_vm2, %v4560_v5  ;;  %v3454_v5 = vld [vmem:[%s5590_s1 + $0x24] sm:$0xf] }
  0x3b   : > { %4010 = vmatprep.mubr.msk.f32.mxu1 %vm337_vm2, %v4702_v2  ;;  %3903 = vmatprep.mubr.msk.f32.mxu0 %vm337_vm2, %v4566_v10 }
  0x3c   : > { %3925 = vmatpush3.msk.msra.mxu0 %vm370_vm0, %v4676_v56  ;;  %v311_v56 = vrot.slane %v4942_v41, 1 }
  0x3d   : > { %3950 = vmatprep.subr.msk.mxu0 %vm370_vm0, %v3362_v26 }
  0x3e   : > { %4011 = vmatmul.mubr.msk.f32.gmra.mrb[4].mxu1 %vm337_vm2, %v4708_v7  ;;  %3904 = vmatmul.mubr.msk.f32.gmra.mrb[2].mxu0 %vm337_vm2, %v4569_v11  ;;  %v4967_v36 = vsel %vm226_vm3, %v311_v56, %v312_v29 }
  0x3f   : > { %4013 = vmatprep.mubr.msk.f32.mxu1 %vm337_vm2, %v4733_v20  ;;  %3906 = vmatprep.mubr.msk.f32.mxu0 %vm337_vm2, %v4575_v16 }
  0x42   : > { %4014 = vmatmul.mubr.msk.f32.gmra.mrb[6].mxu1 %vm337_vm2, %v4740_v28  ;;  %3907 = vmatmul.mubr.msk.f32.gmra.mrb[4].mxu0 %vm337_vm2, %v4578_v17 }
  0x43   : > { %4016 = vmatprep.mubr.msk.f32.mxu1 %vm337_vm2, %v4762_v43  ;;  %3909 = vmatprep.mubr.msk.f32.mxu0 %vm337_vm2, %v4588_v23 }
  0x46   : > { %4017 = vmatmul.mubr.msk.f32.gmra.mrb[8].mxu1 %vm337_vm2, %v4770_v45  ;;  %3910 = vmatmul.mubr.msk.f32.gmra.mrb[6].mxu0 %vm337_vm2, %v4591_v24 }
  0x47   : > { %4019 = vmatprep.mubr.msk.f32.mxu1 %vm337_vm2, %v4784_v57  ;;  %3912 = vmatprep.mubr.msk.f32.mxu0 %vm337_vm2, %v4621_v33 }
  0x4a   : > { %4020 = vmatmul.mubr.msk.f32.gmra.mrb[10].mxu1 %vm337_vm2, %v4792_v60  ;;  %3913 = vmatmul.mubr.msk.f32.gmra.mrb[8].mxu0 %vm337_vm2, %v4624_v34 }
  0x4b   : > { %4022 = vmatprep.mubr.msk.f32.mxu1 %vm337_vm2, %v4802_v6  ;;  %3915 = vmatprep.mubr.msk.f32.mxu0 %vm337_vm2, %v4650_v46 }
  0x4e   : > { %4023 = vmatmul.mubr.msk.f32.gmra.mrb[12].mxu1 %vm337_vm2, %v4811_v13  ;;  %3916 = vmatmul.mubr.msk.f32.gmra.mrb[10].mxu0 %vm337_vm2, %v4653_v47 }
  0x4f   : > { %4025 = vmatprep.mubr.msk.f32.mxu1 %vm337_vm2, %v4818_v15  ;;  %3918 = vmatprep.mubr.msk.f32.mxu0 %vm337_vm2, %v4696_v0 }
  0x52   : > { %4026 = vmatmul.mubr.msk.f32.gmra.mrb[14].mxu1 %vm337_vm2, %v4828_v21  ;;  %3919 = vmatmul.mubr.msk.f32.gmra.mrb[12].mxu0 %vm337_vm2, %v4699_v1 }
  0x53   : > { %4030 = vmatprep.mubr.msk.f32.mxu1 %vm337_vm2, %v4671_v55  ;;  %3921 = vmatprep.mubr.msk.f32.mxu0 %vm337_vm2, %v4730_v19 }
  0x56   : > { %4031 = vmatmul.mubr.msk.f32.vlgmr.msra.gmra.mrb[0].mxu1 %vm337_vm2, %v4685_v59  ;;  %3922 = vmatmul.mubr.msk.f32.gmra.mrb[14].mxu0 %vm337_vm2, %v4737_v22 }
  0x57   : > { %4055 = vmatpush3.msk.msra.mxu1 %vm370_vm0, %v3435_v18  ;;  %4033 = vmatprep.mubr.msk.f32.mxu1 %vm337_vm2, %v4702_v2 }
  0x58   : > { %4184 = vmatprep.subr.msk.mxu1 %vm370_vm0, %v3526_v4  ;;  %3926 = vmatprep.mubr.msk.f32.mxu0 %vm337_vm2, %v4566_v10 }
  0x5a   : > { %4034 = vmatmul.mubr.msk.f32.gmra.mrb[2].mxu1 %vm337_vm2, %v4708_v7  ;;  %3927 = vmatmul.mubr.msk.f32.vlgmr.msra.gmra.mrb[0].mxu0 %vm337_vm2, %v4569_v11 }
  0x5b   : > { %4036 = vmatprep.mubr.msk.f32.mxu1 %vm337_vm2, %v4733_v20  ;;  %3929 = vmatprep.mubr.msk.f32.mxu0 %vm337_vm2, %v4575_v16 }
  0x5c   : > { %3951 = vmatpush3.msk.msra.mxu0 %vm370_vm0, %v3362_v26 }
  0x5d   : > { %4080 = vmatprep.subr.msk.mxu0 %vm370_vm0, %v3454_v5 }
  0x5e   : > { %4037 = vmatmul.mubr.msk.f32.gmra.mrb[4].mxu1 %vm337_vm2, %v4740_v28  ;;  %3930 = vmatmul.mubr.msk.f32.gmra.mrb[2].mxu0 %vm337_vm2, %v4578_v17 }
  0x5f   : > { %4039 = vmatprep.mubr.msk.f32.mxu1 %vm337_vm2, %v4762_v43  ;;  %3932 = vmatprep.mubr.msk.f32.mxu0 %vm337_vm2, %v4588_v23 }
  0x62   : > { %4040 = vmatmul.mubr.msk.f32.gmra.mrb[6].mxu1 %vm337_vm2, %v4770_v45  ;;  %3933 = vmatmul.mubr.msk.f32.gmra.mrb[4].mxu0 %vm337_vm2, %v4591_v24 }
  0x63   : > { %4042 = vmatprep.mubr.msk.f32.mxu1 %vm337_vm2, %v4784_v57  ;;  %3935 = vmatprep.mubr.msk.f32.mxu0 %vm337_vm2, %v4621_v33 }
  0x66   : > { %4043 = vmatmul.mubr.msk.f32.gmra.mrb[8].mxu1 %vm337_vm2, %v4792_v60  ;;  %3936 = vmatmul.mubr.msk.f32.gmra.mrb[6].mxu0 %vm337_vm2, %v4624_v34 }
  0x67   : > { %4045 = vmatprep.mubr.msk.f32.mxu1 %vm337_vm2, %v4802_v6  ;;  %3938 = vmatprep.mubr.msk.f32.mxu0 %vm337_vm2, %v4650_v46 }
  0x6a   : > { %4046 = vmatmul.mubr.msk.f32.gmra.mrb[10].mxu1 %vm337_vm2, %v4811_v13  ;;  %3939 = vmatmul.mubr.msk.f32.gmra.mrb[8].mxu0 %vm337_vm2, %v4653_v47 }
  0x6b   : > { %4048 = vmatprep.mubr.msk.f32.mxu1 %vm337_vm2, %v4818_v15  ;;  %3941 = vmatprep.mubr.msk.f32.mxu0 %vm337_vm2, %v4696_v0 }
  0x6e   : > { %4049 = vmatmul.mubr.msk.f32.gmra.mrb[12].mxu1 %vm337_vm2, %v4828_v21  ;;  %3942 = vmatmul.mubr.msk.f32.gmra.mrb[10].mxu0 %vm337_vm2, %v4699_v1 }
  0x6f   : > { %4051 = vmatprep.mubr.msk.f32.mxu1 %vm337_vm2, %v4967_v36  ;;  %3944 = vmatprep.mubr.msk.f32.mxu0 %vm337_vm2, %v4730_v19 }
  0x72   : > { %4052 = vmatmul.mubr.msk.f32.gmra.mrb[14].mxu1 %vm337_vm2, %v4976_v38  ;;  %3945 = vmatmul.mubr.msk.f32.gmra.mrb[12].mxu0 %vm337_vm2, %v4737_v22 }
  0x73   : > { %4056 = vmatprep.mubr.msk.f32.mxu1 %vm337_vm2, %v4595_v25  ;;  %3947 = vmatprep.mubr.msk.f32.mxu0 %vm337_vm2, %v4942_v41 }
  0x76   : > { %4057 = vmatmul.mubr.msk.f32.vlgmr.msra.gmra.mrb[0].mxu1 %vm337_vm2, %v4607_v27  ;;  %3948 = vmatmul.mubr.msk.f32.gmra.mrb[14].mxu0 %vm337_vm2, %v4945_v51 }
  0x77   : > { %4185 = vmatpush3.msk.msra.mxu1 %vm370_vm0, %v3526_v4  ;;  %4059 = vmatprep.mubr.msk.f32.mxu1 %vm337_vm2, %v4616_v32 }
  0x78   : > { %4210 = vmatprep.subr.msk.mxu1 %vm370_vm0, %v3525_v42  ;;  %3952 = vmatprep.mubr.msk.f32.mxu0 %vm337_vm2, %v4671_v55 }
  0x7a   : > { %4060 = vmatmul.mubr.msk.f32.gmra.mrb[2].mxu1 %vm337_vm2, %v4634_v39  ;;  %3953 = vmatmul.mubr.msk.f32.vlgmr.msra.gmra.mrb[0].mxu0 %vm337_vm2, %v4685_v59 }
  0x7b   : > { %4062 = vmatprep.mubr.msk.f32.mxu1 %vm337_vm2, %v4637_v40  ;;  %3955 = vmatprep.mubr.msk.f32.mxu0 %vm337_vm2, %v4702_v2 }
  0x7c   : > { %4081 = vmatpush3.msk.msra.mxu0 %vm370_vm0, %v3454_v5 }
  0x7d   : > { %4106 = vmatprep.subr.msk.mxu0 %vm370_vm0, %v3453_v44 }
  0x7e   : > { %4063 = vmatmul.mubr.msk.f32.gmra.mrb[4].mxu1 %vm337_vm2, %v4665_v53  ;;  %3956 = vmatmul.mubr.msk.f32.gmra.mrb[2].mxu0 %vm337_vm2, %v4708_v7 }
  0x7f   : > { %4065 = vmatprep.mubr.msk.f32.mxu1 %vm337_vm2, %v4690_v62  ;;  %3958 = vmatprep.mubr.msk.f32.mxu0 %vm337_vm2, %v4733_v20 }
  0x82   : > { %4066 = vmatmul.mubr.msk.f32.gmra.mrb[6].mxu1 %vm337_vm2, %v4719_v9  ;;  %3959 = vmatmul.mubr.msk.f32.gmra.mrb[4].mxu0 %vm337_vm2, %v4740_v28 }
  0x83   : > { %4068 = vmatprep.mubr.msk.f32.mxu1 %vm337_vm2, %v4722_v12  ;;  %3961 = vmatprep.mubr.msk.f32.mxu0 %vm337_vm2, %v4762_v43 }
  0x86   : > { %4069 = vmatmul.mubr.msk.f32.gmra.mrb[8].mxu1 %vm337_vm2, %v4751_v31  ;;  %3962 = vmatmul.mubr.msk.f32.gmra.mrb[6].mxu0 %vm337_vm2, %v4770_v45 }
  0x87   : > { %4071 = vmatprep.mubr.msk.f32.mxu1 %vm337_vm2, %v4757_v37  ;;  %3964 = vmatprep.mubr.msk.f32.mxu0 %vm337_vm2, %v4784_v57 }
  0x8a   : > { %4072 = vmatmul.mubr.msk.f32.gmra.mrb[10].mxu1 %vm337_vm2, %v4775_v49  ;;  %3965 = vmatmul.mubr.msk.f32.gmra.mrb[8].mxu0 %vm337_vm2, %v4792_v60 }
  0x8b   : > { %4074 = vmatprep.mubr.msk.f32.mxu1 %vm337_vm2, %v4781_v54  ;;  %3967 = vmatprep.mubr.msk.f32.mxu0 %vm337_vm2, %v4802_v6 }
  0x8e   : > { %4075 = vmatmul.mubr.msk.f32.gmra.mrb[12].mxu1 %vm337_vm2, %v4797_v63  ;;  %3968 = vmatmul.mubr.msk.f32.gmra.mrb[10].mxu0 %vm337_vm2, %v4811_v13 }
  0x8f   : > { %4077 = vmatprep.mubr.msk.f32.mxu1 %vm337_vm2, %v5049_v58  ;;  %3970 = vmatprep.mubr.msk.f32.mxu0 %vm337_vm2, %v4818_v15 }
  0x92   : > { %4078 = vmatmul.mubr.msk.f32.gmra.mrb[14].mxu1 %vm337_vm2, %v5058_v61  ;;  %3971 = vmatmul.mubr.msk.f32.gmra.mrb[12].mxu0 %vm337_vm2, %v4828_v21 }
  0x93   : > { %4186 = vmatprep.mubr.msk.f32.mxu1 %vm337_vm2, %v4595_v25  ;;  %3973 = vmatprep.mubr.msk.f32.mxu0 %vm337_vm2, %v4967_v36  ;;  %v3489_v25 = vld [vmem:[%s5590_s1 + $0x28] sm:$0xf] }
  0x96   : > { %4187 = vmatmul.mubr.msk.f32.vlgmr.msra.gmra.mrb[16].mxu1 %vm337_vm2, %v4607_v27  ;;  %3974 = vmatmul.mubr.msk.f32.gmra.mrb[14].mxu0 %vm337_vm2, %v4976_v38  ;;  %v3579_v27 = vld [vmem:[%s5590_s1 + $0x3c] sm:$0xf] }
  0x97   : > { %4211 = vmatpush3.msk.msra.mxu1 %vm370_vm0, %v3525_v42  ;;  %4189 = vmatprep.mubr.msk.f32.mxu1 %vm337_vm2, %v4616_v32 }
  0x98   : > { %4236 = vmatprep.subr.msk.mxu1 %vm370_vm0, %v3561_v3  ;;  %4082 = vmatprep.mubr.msk.f32.mxu0 %vm337_vm2, %v4671_v55 }
  0x9a   : > { %4190 = vmatmul.mubr.msk.f32.gmra.mrb[18].mxu1 %vm337_vm2, %v4634_v39  ;;  %4083 = vmatmul.mubr.msk.f32.vlgmr.msra.gmra.mrb[16].mxu0 %vm337_vm2, %v4685_v59 }
  0x9b   : > { %4192 = vmatprep.mubr.msk.f32.mxu1 %vm337_vm2, %v4637_v40  ;;  %4085 = vmatprep.mubr.msk.f32.mxu0 %vm337_vm2, %v4702_v2 }
  0x9c   : > { %4107 = vmatpush3.msk.msra.mxu0 %vm370_vm0, %v3453_v44 }
  0x9d   : > { %4132 = vmatprep.subr.msk.mxu0 %vm370_vm0, %v3489_v25 }
  0x9e   : > { %4193 = vmatmul.mubr.msk.f32.gmra.mrb[20].mxu1 %vm337_vm2, %v4665_v53  ;;  %4086 = vmatmul.mubr.msk.f32.gmra.mrb[18].mxu0 %vm337_vm2, %v4708_v7 }
  0x9f   : > { %4195 = vmatprep.mubr.msk.f32.mxu1 %vm337_vm2, %v4690_v62  ;;  %4088 = vmatprep.mubr.msk.f32.mxu0 %vm337_vm2, %v4733_v20 }
  0xa2   : > { %4196 = vmatmul.mubr.msk.f32.gmra.mrb[22].mxu1 %vm337_vm2, %v4719_v9  ;;  %4089 = vmatmul.mubr.msk.f32.gmra.mrb[20].mxu0 %vm337_vm2, %v4740_v28 }
  0xa3   : > { %4198 = vmatprep.mubr.msk.f32.mxu1 %vm337_vm2, %v4722_v12  ;;  %4091 = vmatprep.mubr.msk.f32.mxu0 %vm337_vm2, %v4762_v43 }
  0xa6   : > { %4199 = vmatmul.mubr.msk.f32.gmra.mrb[24].mxu1 %vm337_vm2, %v4751_v31  ;;  %4092 = vmatmul.mubr.msk.f32.gmra.mrb[22].mxu0 %vm337_vm2, %v4770_v45 }
  0xa7   : > { %4201 = vmatprep.mubr.msk.f32.mxu1 %vm337_vm2, %v4757_v37  ;;  %4094 = vmatprep.mubr.msk.f32.mxu0 %vm337_vm2, %v4784_v57 }
  0xaa   : > { %4202 = vmatmul.mubr.msk.f32.gmra.mrb[26].mxu1 %vm337_vm2, %v4775_v49  ;;  %4095 = vmatmul.mubr.msk.f32.gmra.mrb[24].mxu0 %vm337_vm2, %v4792_v60 }
  0xab   : > { %4204 = vmatprep.mubr.msk.f32.mxu1 %vm337_vm2, %v4781_v54  ;;  %4097 = vmatprep.mubr.msk.f32.mxu0 %vm337_vm2, %v4802_v6 }
  0xae   : > { %4205 = vmatmul.mubr.msk.f32.gmra.mrb[28].mxu1 %vm337_vm2, %v4797_v63  ;;  %4098 = vmatmul.mubr.msk.f32.gmra.mrb[26].mxu0 %vm337_vm2, %v4811_v13 }
  0xaf   : > { %4207 = vmatprep.mubr.msk.f32.mxu1 %vm337_vm2, %v5049_v58  ;;  %4100 = vmatprep.mubr.msk.f32.mxu0 %vm337_vm2, %v4818_v15 }
  0xb2   : > { %4208 = vmatmul.mubr.msk.f32.gmra.mrb[30].mxu1 %vm337_vm2, %v5058_v61  ;;  %4101 = vmatmul.mubr.msk.f32.gmra.mrb[28].mxu0 %vm337_vm2, %v4828_v21 }
  0xb3   : > { %4212 = vmatprep.mubr.msk.f32.mxu1 %vm337_vm2, %v4671_v55  ;;  %4103 = vmatprep.mubr.msk.f32.mxu0 %vm337_vm2, %v4967_v36  ;;  %v3507_v55 = vld [vmem:[%s5590_s1 + $0x2c] sm:$0xf] }
  0xb6   : > { %4213 = vmatmul.mubr.msk.f32.vlgmr.msra.gmra.mrb[16].mxu1 %vm337_vm2, %v4685_v59  ;;  %4104 = vmatmul.mubr.msk.f32.gmra.mrb[30].mxu0 %vm337_vm2, %v4976_v38 }
  0xb7   : > { %4237 = vmatpush3.msk.msra.mxu1 %vm370_vm0, %v3561_v3  ;;  %4215 = vmatprep.mubr.msk.f32.mxu1 %vm337_vm2, %v4702_v2 }
  0xb8   : > { %4262 = vmatprep.subr.msk.mxu1 %vm370_vm0, %v3579_v27  ;;  %4108 = vmatprep.mubr.msk.f32.mxu0 %vm337_vm2, %v4566_v10  ;;  %v198_v10 = vld [vmem:[%s4554_s25 + $0xd8] sm:$0xff] }
  0xba   : > { %4216 = vmatmul.mubr.msk.f32.gmra.mrb[18].mxu1 %vm337_vm2, %v4708_v7  ;;  %4109 = vmatmul.mubr.msk.f32.vlgmr.msra.gmra.mrb[16].mxu0 %vm337_vm2, %v4569_v11  ;;  %v199_v11 = vld [vmem:[%s4554_s25 + $0xe0] sm:$0xff] }
  0xbb   : > { %4218 = vmatprep.mubr.msk.f32.mxu1 %vm337_vm2, %v4733_v20  ;;  %4111 = vmatprep.mubr.msk.f32.mxu0 %vm337_vm2, %v4575_v16 }
  0xbc   : > { %4133 = vmatpush3.msk.msra.mxu0 %vm370_vm0, %v3489_v25 }
  0xbd   : > { %4158 = vmatprep.subr.msk.mxu0 %vm370_vm0, %v3507_v55 }
  0xbe   : > { %4219 = vmatmul.mubr.msk.f32.gmra.mrb[20].mxu1 %vm337_vm2, %v4740_v28  ;;  %4112 = vmatmul.mubr.msk.f32.gmra.mrb[18].mxu0 %vm337_vm2, %v4578_v17 }
  0xbf   : > { %4221 = vmatprep.mubr.msk.f32.mxu1 %vm337_vm2, %v4762_v43  ;;  %4114 = vmatprep.mubr.msk.f32.mxu0 %vm337_vm2, %v4588_v23 }
  0xc2   : > { %4222 = vmatmul.mubr.msk.f32.gmra.mrb[22].mxu1 %vm337_vm2, %v4770_v45  ;;  %4115 = vmatmul.mubr.msk.f32.gmra.mrb[20].mxu0 %vm337_vm2, %v4591_v24 }
  0xc3   : > { %4224 = vmatprep.mubr.msk.f32.mxu1 %vm337_vm2, %v4784_v57  ;;  %4117 = vmatprep.mubr.msk.f32.mxu0 %vm337_vm2, %v4621_v33 }
  0xc6   : > { %4225 = vmatmul.mubr.msk.f32.gmra.mrb[24].mxu1 %vm337_vm2, %v4792_v60  ;;  %4118 = vmatmul.mubr.msk.f32.gmra.mrb[22].mxu0 %vm337_vm2, %v4624_v34 }
  0xc7   : > { %4227 = vmatprep.mubr.msk.f32.mxu1 %vm337_vm2, %v4802_v6  ;;  %4120 = vmatprep.mubr.msk.f32.mxu0 %vm337_vm2, %v4650_v46 }
  0xca   : > { %4228 = vmatmul.mubr.msk.f32.gmra.mrb[26].mxu1 %vm337_vm2, %v4811_v13  ;;  %4121 = vmatmul.mubr.msk.f32.gmra.mrb[24].mxu0 %vm337_vm2, %v4653_v47 }
  0xcb   : > { %4230 = vmatprep.mubr.msk.f32.mxu1 %vm337_vm2, %v4818_v15  ;;  %4123 = vmatprep.mubr.msk.f32.mxu0 %vm337_vm2, %v4696_v0 }
  0xce   : > { %4231 = vmatmul.mubr.msk.f32.gmra.mrb[28].mxu1 %vm337_vm2, %v4828_v21  ;;  %4124 = vmatmul.mubr.msk.f32.gmra.mrb[26].mxu0 %vm337_vm2, %v4699_v1 }
  0xcf   : > { %4233 = vmatprep.mubr.msk.f32.mxu1 %vm337_vm2, %v4967_v36  ;;  %4126 = vmatprep.mubr.msk.f32.mxu0 %vm337_vm2, %v4730_v19 }
  0xd2   : > { %4234 = vmatmul.mubr.msk.f32.gmra.mrb[30].mxu1 %vm337_vm2, %v4976_v38  ;;  %4127 = vmatmul.mubr.msk.f32.gmra.mrb[28].mxu0 %vm337_vm2, %v4737_v22 }
  0xd3   : > { %4238 = vmatprep.mubr.msk.f32.mxu1 %vm337_vm2, %v4702_v2  ;;  %4129 = vmatprep.mubr.msk.f32.mxu0 %vm337_vm2, %v4942_v41 }
  0xd6   : > { %4239 = vmatmul.mubr.msk.f32.vlgmr.msra.gmra.mrb[16].mxu1 %vm337_vm2, %v4708_v7  ;;  %4130 = vmatmul.mubr.msk.f32.gmra.mrb[30].mxu0 %vm337_vm2, %v4945_v51 }
  0xd7   : > { %4263 = vmatpush3.msk.msra.mxu1 %vm370_vm0, %v3579_v27  ;;  %4241 = vmatprep.mubr.msk.f32.mxu1 %vm337_vm2, %v4733_v20 }
  0xd8   : > { %4134 = vmatprep.mubr.msk.f32.mxu0 %vm337_vm2, %v4575_v16  ;;  %v324_v16 = vrot.slane %v198_v10, 1 }
  0xda   : > { %4242 = vmatmul.mubr.msk.f32.gmra.mrb[18].mxu1 %vm337_vm2, %v4740_v28  ;;  %4135 = vmatmul.mubr.msk.f32.vlgmr.msra.gmra.mrb[16].mxu0 %vm337_vm2, %v4578_v17  ;;  %v325_v17 = vrot.slane %v199_v11, 1 }
  0xdb   : > { %4244 = vmatprep.mubr.msk.f32.mxu1 %vm337_vm2, %v4762_v43  ;;  %4137 = vmatprep.mubr.msk.f32.mxu0 %vm337_vm2, %v4588_v23  ;;  %v200_v23 = vld [vmem:[%s4554_s25 + $0xe8] sm:$0xff] }
  0xdc   : > { %4159 = vmatpush3.msk.msra.mxu0 %vm370_vm0, %v3507_v55 }
  0xde   : > { %4245 = vmatmul.mubr.msk.f32.gmra.mrb[20].mxu1 %vm337_vm2, %v4770_v45  ;;  %4138 = vmatmul.mubr.msk.f32.gmra.mrb[18].mxu0 %vm337_vm2, %v4591_v24  ;;  %v327_v24 = vrot.slane %v200_v23, 1 }
  0xdf   : > { %4247 = vmatprep.mubr.msk.f32.mxu1 %vm337_vm2, %v4784_v57  ;;  %4140 = vmatprep.mubr.msk.f32.mxu0 %vm337_vm2, %v4621_v33  ;;  %v326_v33 = vsel %vm226_vm3, %v324_v16, %v325_v17 }
  0xe2   : > { %4248 = vmatmul.mubr.msk.f32.gmra.mrb[22].mxu1 %vm337_vm2, %v4792_v60  ;;  %4141 = vmatmul.mubr.msk.f32.gmra.mrb[20].mxu0 %vm337_vm2, %v4624_v34  ;;  %v328_v34 = vsel %vm226_vm3, %v325_v17, %v327_v24 }
  0xe3   : > { %4250 = vmatprep.mubr.msk.f32.mxu1 %vm337_vm2, %v4802_v6  ;;  %4143 = vmatprep.mubr.msk.f32.mxu0 %vm337_vm2, %v4650_v46 }
  0xe6   : > { %4251 = vmatmul.mubr.msk.f32.gmra.mrb[24].mxu1 %vm337_vm2, %v4811_v13  ;;  %4144 = vmatmul.mubr.msk.f32.gmra.mrb[22].mxu0 %vm337_vm2, %v4653_v47 }
  0xe7   : > { %4253 = vmatprep.mubr.msk.f32.mxu1 %vm337_vm2, %v4818_v15  ;;  %4146 = vmatprep.mubr.msk.f32.mxu0 %vm337_vm2, %v4696_v0 }
  0xea   : > { %4254 = vmatmul.mubr.msk.f32.gmra.mrb[26].mxu1 %vm337_vm2, %v4828_v21  ;;  %4147 = vmatmul.mubr.msk.f32.gmra.mrb[24].mxu0 %vm337_vm2, %v4699_v1 }
  0xeb   : > { %4256 = vmatprep.mubr.msk.f32.mxu1 %vm337_vm2, %v4967_v36  ;;  %4149 = vmatprep.mubr.msk.f32.mxu0 %vm337_vm2, %v4730_v19 }
  0xee   : > { %4257 = vmatmul.mubr.msk.f32.gmra.mrb[28].mxu1 %vm337_vm2, %v4976_v38  ;;  %4150 = vmatmul.mubr.msk.f32.gmra.mrb[26].mxu0 %vm337_vm2, %v4737_v22 }
  0xef   : > { %4259 = vmatprep.mubr.msk.f32.mxu1 %vm337_vm2, %v326_v33  ;;  %4152 = vmatprep.mubr.msk.f32.mxu0 %vm337_vm2, %v4942_v41 }
  0xf2   : > { %4260 = vmatmul.mubr.msk.f32.gmra.mrb[30].mxu1 %vm337_vm2, %v328_v34  ;;  %4153 = vmatmul.mubr.msk.f32.gmra.mrb[28].mxu0 %vm337_vm2, %v4945_v51 }
  0xf3   : > { %4264 = vmatprep.mubr.msk.f32.mxu1 %vm337_vm2, %v4616_v32  ;;  %4155 = vmatprep.mubr.msk.f32.mxu0 %vm337_vm2, %v198_v10  ;;  %v329_v32 = vrot.slane %v198_v10, 2 }
  0xf6   : > { %4265 = vmatmul.mubr.msk.f32.vlgmr.msra.gmra.mrb[16].mxu1 %vm337_vm2, %v4634_v39  ;;  %4156 = vmatmul.mubr.msk.f32.gmra.mrb[30].mxu0 %vm337_vm2, %v199_v11  ;;  %v330_v39 = vrot.slane %v199_v11, 2 }
  0xf7   : > { %4267 = vmatprep.mubr.msk.f32.mxu1 %vm337_vm2, %v4637_v40  ;;  %4160 = vmatprep.mubr.msk.f32.mxu0 %vm337_vm2, %v4702_v2  ;;  %v332_v40 = vrot.slane %v200_v23, 2 }
  0xf8   : > { %v331_v46 = vsel %vm267_vm1, %v329_v32, %v330_v39 }
  0xf9   : > { %v333_v47 = vsel %vm267_vm1, %v330_v39, %v332_v40 }
  0xfa   : > { %4268 = vmatmul.mubr.msk.f32.gmra.mrb[18].mxu1 %vm337_vm2, %v4665_v53  ;;  %4161 = vmatmul.mubr.msk.f32.vlgmr.msra.gmra.mrb[16].mxu0 %vm337_vm2, %v4708_v7  ;;  %v5354_v53 = vld [vmem:[%s5591_s2] ss:$0 sm:$0xff] }
  0xfb   : > { %4270 = vmatprep.mubr.msk.f32.mxu1 %vm337_vm2, %v4690_v62  ;;  %4163 = vmatprep.mubr.msk.f32.mxu0 %vm337_vm2, %v4733_v20 }
  0xfe   : > { %4271 = vmatmul.mubr.msk.f32.gmra.mrb[20].mxu1 %vm337_vm2, %v4719_v9  ;;  %4164 = vmatmul.mubr.msk.f32.gmra.mrb[18].mxu0 %vm337_vm2, %v4740_v28 }
  0xff   : > { %4273 = vmatprep.mubr.msk.f32.mxu1 %vm337_vm2, %v4722_v12  ;;  %4166 = vmatprep.mubr.msk.f32.mxu0 %vm337_vm2, %v4762_v43 }
 0x102   : > { %4274 = vmatmul.mubr.msk.f32.gmra.mrb[22].mxu1 %vm337_vm2, %v4751_v31  ;;  %4167 = vmatmul.mubr.msk.f32.gmra.mrb[20].mxu0 %vm337_vm2, %v4770_v45 }
 0x103   : > { %4276 = vmatprep.mubr.msk.f32.mxu1 %vm337_vm2, %v4757_v37  ;;  %4169 = vmatprep.mubr.msk.f32.mxu0 %vm337_vm2, %v4784_v57 }
 0x106   : > { %4277 = vmatmul.mubr.msk.f32.gmra.mrb[24].mxu1 %vm337_vm2, %v4775_v49  ;;  %4170 = vmatmul.mubr.msk.f32.gmra.mrb[22].mxu0 %vm337_vm2, %v4792_v60 }
 0x107   : > { %4279 = vmatprep.mubr.msk.f32.mxu1 %vm337_vm2, %v4781_v54  ;;  %4172 = vmatprep.mubr.msk.f32.mxu0 %vm337_vm2, %v4802_v6 }
 0x10a   : > { %4280 = vmatmul.mubr.msk.f32.gmra.mrb[26].mxu1 %vm337_vm2, %v4797_v63  ;;  %4173 = vmatmul.mubr.msk.f32.gmra.mrb[24].mxu0 %vm337_vm2, %v4811_v13 }
 0x10b   : > { %4282 = vmatprep.mubr.msk.f32.mxu1 %vm337_vm2, %v5049_v58  ;;  %4175 = vmatprep.mubr.msk.f32.mxu0 %vm337_vm2, %v4818_v15 }
 0x10e   : > { %4283 = vmatmul.mubr.msk.f32.gmra.mrb[28].mxu1 %vm337_vm2, %v5058_v61  ;;  %4176 = vmatmul.mubr.msk.f32.gmra.mrb[26].mxu0 %vm337_vm2, %v4828_v21 }
 0x10f   : > { %4285 = vmatprep.mubr.msk.f32.mxu1 %vm337_vm2, %v331_v46  ;;  %4178 = vmatprep.mubr.msk.f32.mxu0 %vm337_vm2, %v4967_v36 }
 0x112   : > { %4286 = vmatmul.mubr.msk.f32.gmra.mrb[30].mxu1 %vm337_vm2, %v333_v47  ;;  %4179 = vmatmul.mubr.msk.f32.gmra.mrb[28].mxu0 %vm337_vm2, %v4976_v38 }
 0x113   : > { %4181 = vmatprep.mubr.msk.f32.mxu0 %vm337_vm2, %v326_v33 }
 0x116   : > { %4182 = vmatmul.mubr.msk.f32.gmra.mrb[30].mxu0 %vm337_vm2, %v328_v34 }
 0x149   : > { %v4058_v59 = vpop.f32.mrb[0].mxu1 }
 0x14a   : > { %v1746_v62 = vadd.f32 %v4058_v59, %v5354_v53  ;;  %v1650_v0 = vpop.f32.mrb[1].mxu1 }
 0x14b   : > { %v1745_v2 = vadd.f32 %v5354_v53, %v1650_v0 }
 0x14c   : > { %1779 = vrot.lane.b32.xlu0 %v1746_v62, %s4498_s27 }
 0x14d   : > { %v4061_v1 = vpop.f32.mrb[2].mxu1  ;;  %v3954_v19 = vpop.f32.mrb[0].mxu0 }
 0x14e   : > { %v1748_v7 = vadd.f32 %v4061_v1, %v5354_v53  ;;  %v1660_v9 = vpop.f32.mrb[3].mxu1  ;;  %v1046_v28 = vadd.f32 %v3954_v19, %v5354_v53  ;;  %v944_v31 = vpop.f32.mrb[1].mxu0 }
 0x14f   : > { %v1747_v20 = vadd.f32 %v5354_v53, %v1660_v9  ;;  %v1045_v43 = vadd.f32 %v5354_v53, %v944_v31 }
 0x150   : > { %1777 = vrot.lane.b32.xlu0 %v1745_v2, %s4498_s27  ;;  %1783 = vrot.lane.b32.xlu1 %v1748_v7, %s4498_s27  ;;  %1062 = vst.msk [vmem:[%s5366_s4 + $0x8] sm:$0xff] %vm337_vm2, %v1046_v28 }
 0x151   : > { %v4064_v12 = vpop.f32.mrb[4].mxu1  ;;  %1061 = vst.msk [vmem:[%s5366_s4] sm:$0xff] %vm337_vm2, %v1045_v43  ;;  %v3957_v49 = vpop.f32.mrb[2].mxu0 }
 0x152   : > { %v1670_v22 = vpop.f32.mrb[5].mxu1  ;;  %v1750_v54 = vadd.f32 %v4064_v12, %v5354_v53  ;;  %v1048_v60 = vadd.f32 %v3957_v49, %v5354_v53  ;;  %v954_v63 = vpop.f32.mrb[3].mxu0 }
 0x153   : > { %v1749_v37 = vadd.f32 %v5354_v53, %v1670_v22  ;;  %v1047_v8 = vadd.f32 %v5354_v53, %v954_v63 }
 0x154   : > { %1781 = vrot.lane.b32.xlu1 %v1747_v20, %s4498_s27  ;;  %1064 = vst.msk [vmem:[%s5366_s4 + $0x28] sm:$0xff] %vm337_vm2, %v1048_v60 }
 0x155   : > { %1785 = vrot.lane.b32.xlu0 %v1749_v37, %s4498_s27  ;;  %v4067_v45 = vpop.f32.mrb[6].mxu1  ;;  %1063 = vst.msk [vmem:[%s5366_s4 + $0x20] sm:$0xff] %vm337_vm2, %v1047_v8  ;;  %v3960_v14 = vpop.f32.mrb[4].mxu0 }
 0x156   : > { %v1680_v57 = vpop.f32.mrb[7].mxu1  ;;  %v1752_v15 = vadd.f32 %v4067_v45, %v5354_v53  ;;  %v1050_v21 = vadd.f32 %v3960_v14, %v5354_v53  ;;  %v964_v26 = vpop.f32.mrb[5].mxu0 }
 0x157   : > { %v1751_v6 = vadd.f32 %v5354_v53, %v1680_v57  ;;  %v1049_v5 = vadd.f32 %v5354_v53, %v964_v26 }
 0x158   : > { %1787 = vrot.lane.b32.xlu1 %v1750_v54, %s4498_s27  ;;  %1066 = vst.msk [vmem:[%s5366_s4 + $0x48] sm:$0xff] %vm337_vm2, %v1050_v21 }
 0x159   : > { %1789 = vrot.lane.b32.xlu0 %v1751_v6, %s4498_s27  ;;  %v4070_v13 = vpop.f32.mrb[8].mxu1  ;;  %1065 = vst.msk [vmem:[%s5366_s4 + $0x40] sm:$0xff] %vm337_vm2, %v1049_v5  ;;  %v3963_v51 = vpop.f32.mrb[6].mxu0 }
 0x15a   : > { %v1690_v18 = vpop.f32.mrb[9].mxu1  ;;  %v1754_v56 = vadd.f32 %v4070_v13, %v5354_v53  ;;  %v1052_v30 = vadd.f32 %v3963_v51, %v5354_v53  ;;  %v974_v35 = vpop.f32.mrb[7].mxu0 }
 0x15b   : > { %v1753_v4 = vadd.f32 %v5354_v53, %v1690_v18  ;;  %v1051_v38 = vadd.f32 %v5354_v53, %v974_v35 }
 0x15c   : > { %1791 = vrot.lane.b32.xlu1 %v1752_v15, %s4498_s27  ;;  %1068 = vst.msk [vmem:[%s5366_s4 + $0x68] sm:$0xff] %vm337_vm2, %v1052_v30 }
 0x15d   : > { %1793 = vrot.lane.b32.xlu0 %v1753_v4, %s4498_s27  ;;  %v4073_v41 = vpop.f32.mrb[10].mxu1  ;;  %1067 = vst.msk [vmem:[%s5366_s4 + $0x60] sm:$0xff] %vm337_vm2, %v1051_v38  ;;  %v3966_v44 = vpop.f32.mrb[8].mxu0 }
 0x15e   : > { %v1700_v29 = vpop.f32.mrb[11].mxu1  ;;  %v1756_v48 = vadd.f32 %v4073_v41, %v5354_v53  ;;  %v1054_v52 = vadd.f32 %v3966_v44, %v5354_v53  ;;  %v984_v58 = vpop.f32.mrb[9].mxu0 }
 0x15f   : > { %v1755_v36 = vadd.f32 %v5354_v53, %v1700_v29  ;;  %v1053_v3 = vadd.f32 %v5354_v53, %v984_v58 }
 0x160   : > { %1795 = vrot.lane.b32.xlu1 %v1754_v56, %s4498_s27  ;;  %1070 = vst.msk [vmem:[%s5366_s4 + $0x88] sm:$0xff] %vm337_vm2, %v1054_v52 }
 0x161   : > { %1797 = vrot.lane.b32.xlu0 %v1755_v36, %s4498_s27  ;;  %v4076_v42 = vpop.f32.mrb[12].mxu1  ;;  %1069 = vst.msk [vmem:[%s5366_s4 + $0x80] sm:$0xff] %vm337_vm2, %v1053_v3  ;;  %v3969_v27 = vpop.f32.mrb[10].mxu0 }
 0x162   : > { %v1710_v50 = vpop.f32.mrb[13].mxu1  ;;  %v1758_v55 = vadd.f32 %v4076_v42, %v5354_v53  ;;  %v1056_v11 = vadd.f32 %v3969_v27, %v5354_v53  ;;  %v994_v16 = vpop.f32.mrb[11].mxu0 }
 0x163   : > { %v1757_v61 = vadd.f32 %v5354_v53, %v1710_v50  ;;  %v1055_v23 = vadd.f32 %v5354_v53, %v994_v16 }
 0x164   : > { %1799 = vrot.lane.b32.xlu1 %v1756_v48, %s4498_s27  ;;  %1072 = vst.msk [vmem:[%s5366_s4 + $0xa8] sm:$0xff] %vm337_vm2, %v1056_v11 }
 0x165   : > { %1801 = vrot.lane.b32.xlu0 %v1757_v61, %s4498_s27  ;;  %v4079_v25 = vpop.f32.mrb[14].mxu1  ;;  %1071 = vst.msk [vmem:[%s5366_s4 + $0xa0] sm:$0xff] %vm337_vm2, %v1055_v23  ;;  %v3972_v24 = vpop.f32.mrb[12].mxu0 }
 0x166   : > { %v1720_v10 = vpop.f32.mrb[15].mxu1  ;;  %v1760_v33 = vadd.f32 %v4079_v25, %v5354_v53  ;;  %v1058_v34 = vadd.f32 %v3972_v24, %v5354_v53  ;;  %v1004_v32 = vpop.f32.mrb[13].mxu0 }
 0x167   : > { %v1759_v17 = vadd.f32 %v5354_v53, %v1720_v10  ;;  %v1057_v39 = vadd.f32 %v5354_v53, %v1004_v32 }
 0x168   : > { %1803 = vrot.lane.b32.xlu1 %v1758_v55, %s4498_s27  ;;  %1074 = vst.msk [vmem:[%s5366_s4 + $0xc8] sm:$0xff] %vm337_vm2, %v1058_v34 }
 0x169   : > { %1805 = vrot.lane.b32.xlu0 %v1759_v17, %s4498_s27  ;;  %1073 = vst.msk [vmem:[%s5366_s4 + $0xc0] sm:$0xff] %vm337_vm2, %v1057_v39  ;;  %v3975_v40 = vpop.f32.mrb[14].mxu0 }
 0x16a   : > { %v1060_v46 = vadd.f32 %v3975_v40, %v5354_v53  ;;  %v1014_v47 = vpop.f32.mrb[15].mxu0 }
 0x16b   : > { %v1059_v59 = vadd.f32 %v5354_v53, %v1014_v47 }
 0x16c   : > { %1807 = vrot.lane.b32.xlu1 %v1760_v33, %s4498_s27  ;;  %1076 = vst.msk [vmem:[%s5366_s4 + $0xe8] sm:$0xff] %vm337_vm2, %v1060_v46 }
 0x16d   : > { %1075 = vst.msk [vmem:[%s5366_s4 + $0xe0] sm:$0xff] %vm337_vm2, %v1059_v59 }
 0x1be   : > { %v1780_v62 = vpop.permute.xlu0 %1779 }
 0x1bf   : > { %1827 = vst.msk [vmem:[%s5366_s4 + $0x8] sm:$0xff] %vm1825_vm4, %v1780_v62 }
 0x1c2   : > { %v1778_v0 = vpop.permute.xlu0 %1777  ;;  %v1784_v1 = vpop.permute.xlu1 %1783 }
 0x1c3   : > { %1826 = vst.msk [vmem:[%s5366_s4] sm:$0xff] %vm1825_vm4, %v1778_v0  ;;  %1829 = vst.msk [vmem:[%s5366_s4 + $0x28] sm:$0xff] %vm1825_vm4, %v1784_v1 }
 0x1c6   : > { %v1782_v2 = vpop.permute.xlu1 %1781 }
 0x1c7   : > { %1828 = vst.msk [vmem:[%s5366_s4 + $0x20] sm:$0xff] %vm1825_vm4, %v1782_v2  ;;  %v1786_v7 = vpop.permute.xlu0 %1785 }
 0x1c8   : > { %1830 = vst.msk [vmem:[%s5366_s4 + $0x40] sm:$0xff] %vm1825_vm4, %v1786_v7 }
 0x1c9   : > { %v4266_v9 = vpop.f32.mrb[16].mxu1 }
 0x1ca   : > { %v3151_v12 = vadd.f32 %v4266_v9, %v5354_v53  ;;  %v1788_v19 = vpop.permute.xlu1 %1787  ;;  %v3055_v20 = vpop.f32.mrb[17].mxu1 }
 0x1cb   : > { %1831 = vst.msk [vmem:[%s5366_s4 + $0x48] sm:$0xff] %vm1825_vm4, %v1788_v19  ;;  %v3150_v22 = vadd.f32 %v5354_v53, %v3055_v20  ;;  %v1790_v28 = vpop.permute.xlu0 %1789 }
 0x1cc   : > { %1832 = vst.msk [vmem:[%s5366_s4 + $0x60] sm:$0xff] %vm1825_vm4, %v1790_v28  ;;  %3184 = vrot.lane.b32.xlu1 %v3151_v12, %s4498_s27 }
 0x1cd   : > { %v4269_v31 = vpop.f32.mrb[18].mxu1  ;;  %3182 = vrot.lane.b32.xlu0 %v3150_v22, %s4498_s27  ;;  %v4162_v60 = vpop.f32.mrb[16].mxu0 }
 0x1ce   : > { %v3153_v37 = vadd.f32 %v4269_v31, %v5354_v53  ;;  %v1792_v43 = vpop.permute.xlu1 %1791  ;;  %v3065_v45 = vpop.f32.mrb[19].mxu1  ;;  %v2483_v13 = vadd.f32 %v4162_v60, %v5354_v53 }
 0x1cf   : > { %1833 = vst.msk [vmem:[%s5366_s4 + $0x68] sm:$0xff] %vm1825_vm4, %v1792_v43  ;;  %v3152_v49 = vadd.f32 %v5354_v53, %v3065_v45  ;;  %v1794_v54 = vpop.permute.xlu0 %1793  ;;  %v2387_v18 = vpop.f32.mrb[17].mxu0 }
 0x1d0   : > { %1834 = vst.msk [vmem:[%s5366_s4 + $0x80] sm:$0xff] %vm1825_vm4, %v1794_v54  ;;  %3188 = vrot.lane.b32.xlu1 %v3153_v37, %s4498_s27  ;;  %v2482_v21 = vadd.f32 %v5354_v53, %v2387_v18 }
 0x1d1   : > { %v4272_v57 = vpop.f32.mrb[20].mxu1  ;;  %3186 = vrot.lane.b32.xlu0 %v3152_v49, %s4498_s27  ;;  %2499 = vst.msk [vmem:[%s5366_s4 + $0x18] sm:$0xff] %vm337_vm2, %v2483_v13  ;;  %v4165_v4 = vpop.f32.mrb[18].mxu0 }
 0x1d2   : > { %v3155_v63 = vadd.f32 %v4272_v57, %v5354_v53  ;;  %v1796_v6 = vpop.permute.xlu1 %1795  ;;  %v3075_v8 = vpop.f32.mrb[21].mxu1  ;;  %2498 = vst.msk [vmem:[%s5366_s4 + $0x10] sm:$0xff] %vm337_vm2, %v2482_v21  ;;  %v2485_v56 = vadd.f32 %v4165_v4, %v5354_v53 }
 0x1d3   : > { %1835 = vst.msk [vmem:[%s5366_s4 + $0x88] sm:$0xff] %vm1825_vm4, %v1796_v6  ;;  %v3154_v14 = vadd.f32 %v5354_v53, %v3075_v8  ;;  %v1798_v15 = vpop.permute.xlu0 %1797  ;;  %v2397_v35 = vpop.f32.mrb[19].mxu0 }
 0x1d4   : > { %1836 = vst.msk [vmem:[%s5366_s4 + $0xa0] sm:$0xff] %vm1825_vm4, %v1798_v15  ;;  %3192 = vrot.lane.b32.xlu1 %v3155_v63, %s4498_s27  ;;  %v2484_v36 = vadd.f32 %v5354_v53, %v2397_v35 }
 0x1d5   : > { %v4275_v26 = vpop.f32.mrb[22].mxu1  ;;  %3190 = vrot.lane.b32.xlu0 %v3154_v14, %s4498_s27  ;;  %2501 = vst.msk [vmem:[%s5366_s4 + $0x38] sm:$0xff] %vm337_vm2, %v2485_v56  ;;  %v4168_v42 = vpop.f32.mrb[20].mxu0 }
 0x1d6   : > { %v3157_v5 = vadd.f32 %v4275_v26, %v5354_v53  ;;  %v1800_v41 = vpop.permute.xlu1 %1799  ;;  %v3085_v51 = vpop.f32.mrb[23].mxu1  ;;  %2500 = vst.msk [vmem:[%s5366_s4 + $0x30] sm:$0xff] %vm337_vm2, %v2484_v36  ;;  %v2487_v52 = vadd.f32 %v4168_v42, %v5354_v53 }
 0x1d7   : > { %1837 = vst.msk [vmem:[%s5366_s4 + $0xa8] sm:$0xff] %vm1825_vm4, %v1800_v41  ;;  %v3156_v29 = vadd.f32 %v5354_v53, %v3085_v51  ;;  %v1802_v30 = vpop.permute.xlu0 %1801  ;;  %v2407_v3 = vpop.f32.mrb[21].mxu0 }
 0x1d8   : > { %1838 = vst.msk [vmem:[%s5366_s4 + $0xc0] sm:$0xff] %vm1825_vm4, %v1802_v30  ;;  %3196 = vrot.lane.b32.xlu1 %v3157_v5, %s4498_s27  ;;  %v2486_v25 = vadd.f32 %v5354_v53, %v2407_v3 }
 0x1d9   : > { %v4278_v38 = vpop.f32.mrb[24].mxu1  ;;  %3194 = vrot.lane.b32.xlu0 %v3156_v29, %s4498_s27  ;;  %2503 = vst.msk [vmem:[%s5366_s4 + $0x58] sm:$0xff] %vm337_vm2, %v2487_v52  ;;  %v4171_v55 = vpop.f32.mrb[22].mxu0 }
 0x1da   : > { %v3159_v44 = vadd.f32 %v4278_v38, %v5354_v53  ;;  %v1804_v48 = vpop.permute.xlu1 %1803  ;;  %v3095_v50 = vpop.f32.mrb[25].mxu1  ;;  %2502 = vst.msk [vmem:[%s5366_s4 + $0x50] sm:$0xff] %vm337_vm2, %v2486_v25  ;;  %v2489_v17 = vadd.f32 %v4171_v55, %v5354_v53 }
 0x1db   : > { %1839 = vst.msk [vmem:[%s5366_s4 + $0xc8] sm:$0xff] %vm1825_vm4, %v1804_v48  ;;  %v3158_v58 = vadd.f32 %v5354_v53, %v3095_v50  ;;  %v1806_v61 = vpop.permute.xlu0 %1805  ;;  %v2417_v24 = vpop.f32.mrb[23].mxu0 }
 0x1dc   : > { %1840 = vst.msk [vmem:[%s5366_s4 + $0xe0] sm:$0xff] %vm1825_vm4, %v1806_v61  ;;  %3200 = vrot.lane.b32.xlu1 %v3159_v44, %s4498_s27  ;;  %v2488_v33 = vadd.f32 %v5354_v53, %v2417_v24 }
 0x1dd   : > { %v4281_v27 = vpop.f32.mrb[26].mxu1  ;;  %3198 = vrot.lane.b32.xlu0 %v3158_v58, %s4498_s27  ;;  %2505 = vst.msk [vmem:[%s5366_s4 + $0x78] sm:$0xff] %vm337_vm2, %v2489_v17  ;;  %v4174_v32 = vpop.f32.mrb[24].mxu0 }
 0x1de   : > { %v3161_v10 = vadd.f32 %v4281_v27, %v5354_v53  ;;  %v1808_v11 = vpop.permute.xlu1 %1807  ;;  %v3105_v16 = vpop.f32.mrb[27].mxu1  ;;  %2504 = vst.msk [vmem:[%s5366_s4 + $0x70] sm:$0xff] %vm337_vm2, %v2488_v33  ;;  %v2491_v46 = vadd.f32 %v4174_v32, %v5354_v53 }
 0x1df   : > { %1841 = vst.msk [vmem:[%s5366_s4 + $0xe8] sm:$0xff] %vm1825_vm4, %v1808_v11  ;;  %v3160_v23 = vadd.f32 %v5354_v53, %v3105_v16  ;;  %v2427_v47 = vpop.f32.mrb[25].mxu0 }
 0x1e0   : > { %3204 = vrot.lane.b32.xlu1 %v3161_v10, %s4498_s27  ;;  %v2490_v62 = vadd.f32 %v5354_v53, %v2427_v47  ;;  %2507 = vst.msk [vmem:[%s5366_s4 + $0x98] sm:$0xff] %vm337_vm2, %v2491_v46 }
 0x1e1   : > { %v4284_v34 = vpop.f32.mrb[28].mxu1  ;;  %3202 = vrot.lane.b32.xlu0 %v3160_v23, %s4498_s27  ;;  %v4177_v1 = vpop.f32.mrb[26].mxu0 }
 0x1e2   : > { %v3163_v39 = vadd.f32 %v4284_v34, %v5354_v53  ;;  %v3115_v40 = vpop.f32.mrb[29].mxu1  ;;  %2506 = vst.msk [vmem:[%s5366_s4 + $0x90] sm:$0xff] %vm337_vm2, %v2490_v62  ;;  %v2493_v9 = vadd.f32 %v4177_v1, %v5354_v53  ;;  %v2437_v12 = vpop.f32.mrb[27].mxu0 }
 0x1e3   : > { %v3162_v59 = vadd.f32 %v5354_v53, %v3115_v40  ;;  %v2492_v20 = vadd.f32 %v5354_v53, %v2437_v12 }
 0x1e4   : > { %3208 = vrot.lane.b32.xlu1 %v3163_v39, %s4498_s27  ;;  %2509 = vst.msk [vmem:[%s5366_s4 + $0xb8] sm:$0xff] %vm337_vm2, %v2493_v9 }
 0x1e5   : > { %v4287_v0 = vpop.f32.mrb[30].mxu1  ;;  %3206 = vrot.lane.b32.xlu0 %v3162_v59, %s4498_s27  ;;  %2508 = vst.msk [vmem:[%s5366_s4 + $0xb0] sm:$0xff] %vm337_vm2, %v2492_v20  ;;  %v4180_v22 = vpop.f32.mrb[28].mxu0 }
 0x1e6   : > { %v3165_v2 = vadd.f32 %v4287_v0, %v5354_v53  ;;  %v3125_v7 = vpop.f32.mrb[31].mxu1  ;;  %v2495_v28 = vadd.f32 %v4180_v22, %v5354_v53  ;;  %v2447_v31 = vpop.f32.mrb[29].mxu0 }
 0x1e7   : > { %v3164_v19 = vadd.f32 %v5354_v53, %v3125_v7  ;;  %v2494_v37 = vadd.f32 %v5354_v53, %v2447_v31 }
 0x1e8   : > { %3212 = vrot.lane.b32.xlu1 %v3165_v2, %s4498_s27  ;;  %2511 = vst.msk [vmem:[%s5366_s4 + $0xd8] sm:$0xff] %vm337_vm2, %v2495_v28 }
 0x1e9   : > { %3210 = vrot.lane.b32.xlu0 %v3164_v19, %s4498_s27  ;;  %2510 = vst.msk [vmem:[%s5366_s4 + $0xd0] sm:$0xff] %vm337_vm2, %v2494_v37  ;;  %v4183_v43 = vpop.f32.mrb[30].mxu0 }
 0x1ea   : > { %v2497_v45 = vadd.f32 %v4183_v43, %v5354_v53  ;;  %v2457_v49 = vpop.f32.mrb[31].mxu0 }
 0x1eb   : > { %v2496_v54 = vadd.f32 %v5354_v53, %v2457_v49 }
 0x1ec   : > { %2513 = vst.msk [vmem:[%s5366_s4 + $0xf8] sm:$0xff] %vm337_vm2, %v2497_v45 }
 0x1ed   : > { %2512 = vst.msk [vmem:[%s5366_s4 + $0xf0] sm:$0xff] %vm337_vm2, %v2496_v54 }
 0x23e   : > { %v3185_v57 = vpop.permute.xlu1 %3184 }
 0x23f   : > { %3231 = vst.msk [vmem:[%s5366_s4 + $0x18] sm:$0xff] %vm1825_vm4, %v3185_v57  ;;  %v3183_v60 = vpop.permute.xlu0 %3182 }
 0x240   : > { %3230 = vst.msk [vmem:[%s5366_s4 + $0x10] sm:$0xff] %vm1825_vm4, %v3183_v60 }
 0x242   : > { %v3189_v63 = vpop.permute.xlu1 %3188 }
 0x243   : > { %3233 = vst.msk [vmem:[%s5366_s4 + $0x38] sm:$0xff] %vm1825_vm4, %v3189_v63  ;;  %v3187_v6 = vpop.permute.xlu0 %3186 }
 0x244   : > { %3232 = vst.msk [vmem:[%s5366_s4 + $0x30] sm:$0xff] %vm1825_vm4, %v3187_v6 }
 0x246   : > { %v3193_v53 = vpop.permute.xlu1 %3192 }
 0x247   : > { %3235 = vst.msk [vmem:[%s5366_s4 + $0x58] sm:$0xff] %vm1825_vm4, %v3193_v53  ;;  %v3191_v8 = vpop.permute.xlu0 %3190 }
 0x248   : > { %3234 = vst.msk [vmem:[%s5366_s4 + $0x50] sm:$0xff] %vm1825_vm4, %v3191_v8 }
 0x24a   : > { %v3197_v13 = vpop.permute.xlu1 %3196 }
 0x24b   : > { %3237 = vst.msk [vmem:[%s5366_s4 + $0x78] sm:$0xff] %vm1825_vm4, %v3197_v13  ;;  %v3195_v14 = vpop.permute.xlu0 %3194 }
 0x24c   : > { %3236 = vst.msk [vmem:[%s5366_s4 + $0x70] sm:$0xff] %vm1825_vm4, %v3195_v14 }
 0x24e   : > { %v3201_v15 = vpop.permute.xlu1 %3200 }
 0x24f   : > { %3239 = vst.msk [vmem:[%s5366_s4 + $0x98] sm:$0xff] %vm1825_vm4, %v3201_v15  ;;  %v3199_v18 = vpop.permute.xlu0 %3198 }
 0x250   : > { %3238 = vst.msk [vmem:[%s5366_s4 + $0x90] sm:$0xff] %vm1825_vm4, %v3199_v18 }
 0x252   : > { %v3205_v21 = vpop.permute.xlu1 %3204 }
 0x253   : > { %3241 = vst.msk [vmem:[%s5366_s4 + $0xb8] sm:$0xff] %vm1825_vm4, %v3205_v21  ;;  %v3203_v26 = vpop.permute.xlu0 %3202 }
 0x254   : > { %3240 = vst.msk [vmem:[%s5366_s4 + $0xb0] sm:$0xff] %vm1825_vm4, %v3203_v26 }
 0x256   : > { %v3209_v4 = vpop.permute.xlu1 %3208 }
 0x257   : > { %3243 = vst.msk [vmem:[%s5366_s4 + $0xd8] sm:$0xff] %vm1825_vm4, %v3209_v4  ;;  %v3207_v5 = vpop.permute.xlu0 %3206 }
 0x258   : > { %3242 = vst.msk [vmem:[%s5366_s4 + $0xd0] sm:$0xff] %vm1825_vm4, %v3207_v5 }
 0x25a   : > { %v3213_v41 = vpop.permute.xlu1 %3212 }
 0x25b   : > { %3245 = vst.msk [vmem:[%s5366_s4 + $0xf8] sm:$0xff] %vm1825_vm4, %v3213_v41  ;;  %v3211_v51 = vpop.permute.xlu0 %3210 }
 0x25c   : > { %3244 = vst.msk [vmem:[%s5366_s4 + $0xf0] sm:$0xff] %vm1825_vm4, %v3211_v51 }
 0x25d PF: > { %s13_s12 = sadd.s32 1, %s4496_s12  }
 0x25e   : > { %p10_p4 = scmp.ge.s32.totalorder %s13_s12, 6  }
 0x260   :  { %12 = sbr.rel (!%p10_p4) target bundleno = 1 (0x1), region = 77 }

</bundles_post_ra>
